<compile_context>
chip_gen: v5e
topology: v5e:2x2
jax: 0.10.0
libtpu: 0.0.40
codegen_flags: <defaults>
</compile_context>

<pallas_src>
import math

import jax
import jax.numpy as jnp
from jax.experimental import pallas as pl
from jax.experimental.pallas import tpu as pltpu

BN_EPS = 1e-5


# ----------------------------------------------------------------------------- kernel
def _fused_block_kernel(a_hbm, x0_hbm, w_ref, s_ref, o_ref, a_vmem, xin_ref, dma_sem):
    """Grid step l == one reslayer of the Inception block (aggrmethod='add').

    subx = relu( [A@h | h] @ [W*s ; Wself*s] + shift )     (BN + bias folded on host)
    h   <- h + subx                                        (_doconcat 'add')

    State layout:
      o_ref   : (N, F) f32  -- the running node state h; VMEM-resident across grid steps
                               (constant-index output block) and IS the kernel output.
      a_vmem  : (N, N) bf16 -- adjacency, DMA'd once at l == 0, resident afterwards.
      xin_ref : (N, 2F) bf16 -- packed MXU input; [:, :F] = A@h, [:, F:] = bf16 shadow of h.
    """
    l = pl.program_id(0)
    f = o_ref.shape[1]

    @pl.when(l == 0)
    def _init():
        # One-time DMAs: adjacency -> resident VMEM scratch (single-buffered),
        # input features -> output block (which doubles as the h accumulator).
        a_cp = pltpu.make_async_copy(a_hbm, a_vmem, dma_sem.at[0])
        x_cp = pltpu.make_async_copy(x0_hbm, o_ref, dma_sem.at[1])
        a_cp.start()
        x_cp.start()
        x_cp.wait()
        xin_ref[:, f:] = o_ref[...].astype(xin_ref.dtype)   # bf16 shadow of h
        a_cp.wait()

    # spmm(graph, h @ W) reassociated to (A @ h) @ W: the NxN matmul runs with K=F and both
    # projections come out of a single packed K=2F MXU matmul below.
    ah = jnp.dot(a_vmem[...], xin_ref[:, f:], preferred_element_type=jnp.float32)  # (N, F) f32
    xin_ref[:, :f] = ah.astype(xin_ref.dtype)

    pre = jnp.dot(xin_ref[...], w_ref[...], preferred_element_type=jnp.float32) + s_ref[...]
    subx = jnp.maximum(pre, 0.0)          # activation = ReLU; F.dropout is identity in eval

    o_ref[...] = o_ref[...] + subx        # _doconcat, aggrmethod='add'  (h accumulates in-place)
    xin_ref[:, f:] = o_ref[...].astype(xin_ref.dtype)   # refresh bf16 shadow for next reslayer


# ----------------------------------------------------------------------------- wrapper
def fold_and_pack(p):
    """Fold eval-mode BatchNorm1d + bias into the projection weights.

    With scale = gamma * rsqrt(running_var + eps):
      BN(A@(x@W) + x@Ws + b) = (A@x)@(W*scale) + x@(Ws*scale) + (b - running_mean)*scale + beta
    Returns the packed weight [W*scale ; Ws*scale]  (2*in, out)  and the shift vector (out,).
    """
    scale = p["gamma"] * jax.lax.rsqrt(p["rvar"] + BN_EPS)
    wp = jnp.concatenate([p["w"] * scale, p["w_self"] * scale], axis=0)
    shift = (p["b"] - p["rmean"]) * scale + p["beta"]
    return wp, shift


def inception_gcn_block_add(adj, x, reslayer_params, *, compute_dtype=jnp.bfloat16):
    """Fused InceptionGCNBlock forward (aggrmethod='add', eval mode) in one pallas_call."""
    n, f = x.shape
    # Only the last GraphConvolutionBS of each reslayer contributes: the spec's inner loop
    # evaluates gc(graph, x) with the reslayer-invariant x and overwrites subx each time.
    used = [reslayer[-1] for reslayer in reslayer_params]
    folded = [fold_and_pack(p) for p in used]
    wpack = jnp.stack([wp for wp, _ in folded]).astype(compute_dtype)   # (L, 2F, F)
    shift = jnp.stack([s for _, s in folded])[:, None, :]               # (L, 1, F) f32
    num_layers = len(used)

    itemsize = jnp.dtype(compute_dtype).itemsize
    # Resident footprint: adjacency (single copy) + packed-input shadow + output accumulator
    # (allow 2x) + double-buffered per-layer weights/shift + headroom for compiler scratch.
    vmem_limit = int(
        n * n * itemsize
        + n * 2 * f * itemsize
        + 2 * n * f * 4
        + 2 * (2 * f * f * itemsize + f * 4)
        + (8 << 20)
    )
    vmem_limit = min(vmem_limit, 100 << 20)

    return pl.pallas_call(
        _fused_block_kernel,
        grid=(num_layers,),
        out_shape=jax.ShapeDtypeStruct((n, f), jnp.float32),
        in_specs=[
            pl.BlockSpec(memory_space=pl.ANY),                    # adjacency: manual DMA once
            pl.BlockSpec(memory_space=pl.ANY),                    # x0: manual DMA once -> o_ref
            pl.BlockSpec((None, 2 * f, f), lambda l: (l, 0, 0)),  # per-reslayer packed folded W
            pl.BlockSpec((None, 1, f), lambda l: (l, 0, 0)),      # per-reslayer folded shift
        ],
        out_specs=pl.BlockSpec((n, f), lambda l: (0, 0)),         # resident accumulator == h
        scratch_shapes=[
            pltpu.VMEM((n, n), compute_dtype),                    # resident bf16 adjacency
            pltpu.VMEM((n, 2 * f), compute_dtype),                # packed MXU input [A@h | h]
            pltpu.SemaphoreType.DMA((2,)),
        ],
        compiler_params=pltpu.CompilerParams(
            dimension_semantics=("arbitrary",),                   # reslayers are sequential
            vmem_limit_bytes=vmem_limit,
        ),
    )(adj.astype(compute_dtype), x.astype(jnp.float32), wpack, shift)


# ----------------------------------------------------------------------------- params
def init_gcn_params(key, in_f, out_f):
    """GraphConvolutionBS parameters (withbn=True, withloop=True, bias=True).

    Weights follow reset_parameters: uniform(-stdv, stdv) with stdv = 1/sqrt(out_features).
    BN affine / running stats are randomized (emulating a trained module) so the BN fold
    is exercised non-trivially.
    """
    k = jax.random.split(key, 7)
    stdv = 1.0 / math.sqrt(out_f)
    return dict(
        w=jax.random.uniform(k[0], (in_f, out_f), jnp.float32, -stdv, stdv),
        w_self=jax.random.uniform(k[1], (in_f, out_f), jnp.float32, -stdv, stdv),
        b=jax.random.uniform(k[2], (out_f,), jnp.float32, -stdv, stdv),
        gamma=jax.random.uniform(k[3], (out_f,), jnp.float32, 0.5, 1.5),
        beta=0.1 * jax.random.normal(k[4], (out_f,), jnp.float32),
        rmean=0.1 * jax.random.normal(k[5], (out_f,), jnp.float32),
        rvar=jax.random.uniform(k[6], (out_f,), jnp.float32, 0.5, 1.5),
    )


def make_reslayer_params(key, in_f, hid, nbaselayer):
    """Mirror InceptionGCNBlock.__makehidden: reslayer j holds j+1 GCN layers."""
    total = nbaselayer * (nbaselayer + 1) // 2
    keys = jax.random.split(key, total)
    reslayers, idx = [], 0
    for j in range(nbaselayer):
        layers = []
        for i in range(j + 1):
            layers.append(init_gcn_params(keys[idx], in_f if i == 0 else hid, hid))
            idx += 1
        reslayers.append(layers)
    return reslayers


# ----------------------------------------------------------------------------- references
def reference_forward(adj, x, reslayer_params):
    """Literal pure-JAX f32 InceptionGCNBlock.forward (aggrmethod='add', eval mode)."""
    hp = jax.lax.Precision.HIGHEST
    for reslayer in reslayer_params:
        subx = x
        for p in reslayer:
            support = jnp.dot(x, p["w"], precision=hp)          # x @ W
            out = jnp.dot(adj, support, precision=hp)           # spmm(graph, support)
            out = out + jnp.dot(x, p["w_self"], precision=hp)   # self-loop term
            out = out + p["b"]                                  # bias
            out = (out - p["rmean"]) * jax.lax.rsqrt(p["rvar"] + BN_EPS) * p["gamma"] + p["beta"]
            subx = jnp.maximum(out, 0.0)    # activation = relu; dropout identity in eval
        x = x + subx                        # _doconcat, aggrmethod='add'
    return x


def mirror_forward(adj, x, reslayer_params, compute_dtype):
    """Pure-JAX mirror of the exact folded / packed / reassociated math the kernel runs."""
    h = x.astype(jnp.float32)
    a = adj.astype(compute_dtype)
    for p in [rl[-1] for rl in reslayer_params]:
        wp, shift = fold_and_pack(p)
        wp = wp.astype(compute_dtype)
        h_lo = h.astype(compute_dtype)
        ah = jnp.dot(a, h_lo, preferred_element_type=jnp.float32)
        xin = jnp.concatenate([ah.astype(compute_dtype), h_lo], axis=1)
        subx = jnp.maximum(jnp.dot(xin, wp, preferred_element_type=jnp.float32) + shift, 0.0)
        h = h + subx
    return h


# ----------------------------------------------------------------------------- demo / check
if __name__ == "__main__":
    key = jax.random.PRNGKey(0)
    # aggrmethod='add' requires in_features == hiddendim; small but MXU/lane-friendly shapes.
    N, FEAT, NBASE = 256, 128, 3

    kx, ka, kp = jax.random.split(key, 3)
    x = jax.random.normal(kx, (N, FEAT), jnp.float32)

    # Synthetic graph: symmetric random adjacency + self loops, row-normalized
    # (dense stand-in for the torch spmm graph operand).
    logits = jax.random.uniform(ka, (N, N), jnp.float32)
    a = (logits + logits.T > 1.4).astype(jnp.float32) + jnp.eye(N, dtype=jnp.float32)
    adj = a / jnp.sum(a, axis=1, keepdims=True)

    params = make_reslayer_params(kp, FEAT, FEAT, NBASE)

    out = inception_gcn_block_add(adj, x, params, compute_dtype=jnp.bfloat16)
    out = jax.block_until_ready(out)
    assert out.shape == (N, FEAT), out.shape

    # (1) Structural check (tight): kernel vs a pure-JAX mirror of the identical fused math
    #     (bf16 operands, f32 accumulation) -- differences are accumulation-order only.
    mirror = mirror_forward(adj, x, params, jnp.bfloat16)
    err_mirror = float(jnp.max(jnp.abs(out - mirror)))
    assert jnp.allclose(out, mirror, atol=2e-3, rtol=2e-3), err_mirror

    # (2) Semantic check vs the literal f32 module forward: the gap is bf16 operand
    #     quantization (~0.4% per operand) compounded over the NBASE fused residual layers.
    ref = reference_forward(adj, x, params)
    err_ref = float(jnp.max(jnp.abs(out - ref)))
    assert jnp.allclose(out, ref, atol=1e-1, rtol=1e-1), err_ref

    print("KERNEL_OK")
</pallas_src>

<mosaic_0001>
module attributes {stable_mosaic.version = 11 : i64} {
  func.func @_fused_block_kernel(%arg0: i32, %arg1: memref<256x256xbf16, #tpu.memory_space<any>>, %arg2: memref<256x128xf32, #tpu.memory_space<any>>, %arg3: memref<1x256x128xbf16, #tpu.memory_space<vmem>>, %arg4: memref<1x1x128xf32, #tpu.memory_space<vmem>>, %arg5: memref<256x128xf32, #tpu.memory_space<vmem>>, %arg6: memref<256x256xbf16, #tpu.memory_space<vmem>>, %arg7: memref<256x256xbf16, #tpu.memory_space<vmem>>, %arg8: memref<2x!tpu.dma_semaphore, #tpu.memory_space<semaphore_mem>>) attributes {dimension_semantics = [#tpu.dimension_semantics<arbitrary>], iteration_bounds = array<i64: 3>, scalar_prefetch = 0 : i64, scratch_operands = 3 : i64, tpu.core_type = #tpu.core_type<tc>, window_params = [{}, {}, {transform_indices = @transform_2, window_bounds = array<i64: 1, 256, 128>}, {transform_indices = @transform_3, window_bounds = array<i64: 1, 1, 128>}, {pipeline_mode = #tpu.pipeline_mode<synchronous>, transform_indices = @transform_4, window_bounds = array<i64: 256, 128>}]} {
    %c0_i32 = arith.constant 0 : i32
    %0 = arith.cmpi eq, %arg0, %c0_i32 : i32
    %1 = arith.extui %0 : i1 to i32
    %c0_i32_0 = arith.constant 0 : i32
    %2 = arith.cmpi ne, %1, %c0_i32_0 : i32
    scf.if %2 {
      %c0_i32_23 = arith.constant 0 : i32
      %24 = tpu.memref_slice %arg8[%c0_i32_23] : memref<2x!tpu.dma_semaphore, #tpu.memory_space<semaphore_mem>> -> memref<1x!tpu.dma_semaphore, #tpu.memory_space<semaphore_mem>>
      %25 = tpu.memref_squeeze %24 : memref<1x!tpu.dma_semaphore, #tpu.memory_space<semaphore_mem>> -> memref<!tpu.dma_semaphore, #tpu.memory_space<semaphore_mem>>
      tpu.enqueue_dma source(%arg1 : memref<256x256xbf16, #tpu.memory_space<any>>) target(%arg6 : memref<256x256xbf16, #tpu.memory_space<vmem>>) target_semaphore(%25 : memref<!tpu.dma_semaphore, #tpu.memory_space<semaphore_mem>>)
      %c1_i32 = arith.constant 1 : i32
      %26 = tpu.memref_slice %arg8[%c1_i32] : memref<2x!tpu.dma_semaphore, #tpu.memory_space<semaphore_mem>> -> memref<1x!tpu.dma_semaphore, #tpu.memory_space<semaphore_mem>>
      %27 = tpu.memref_squeeze %26 : memref<1x!tpu.dma_semaphore, #tpu.memory_space<semaphore_mem>> -> memref<!tpu.dma_semaphore, #tpu.memory_space<semaphore_mem>>
      tpu.enqueue_dma source(%arg2 : memref<256x128xf32, #tpu.memory_space<any>>) target(%arg5 : memref<256x128xf32, #tpu.memory_space<vmem>>) target_semaphore(%27 : memref<!tpu.dma_semaphore, #tpu.memory_space<semaphore_mem>>)
      %c1_i32_24 = arith.constant 1 : i32
      %28 = tpu.memref_slice %arg8[%c1_i32_24] : memref<2x!tpu.dma_semaphore, #tpu.memory_space<semaphore_mem>> -> memref<1x!tpu.dma_semaphore, #tpu.memory_space<semaphore_mem>>
      %29 = tpu.memref_squeeze %28 : memref<1x!tpu.dma_semaphore, #tpu.memory_space<semaphore_mem>> -> memref<!tpu.dma_semaphore, #tpu.memory_space<semaphore_mem>>
      tpu.wait_dma2 semaphore(%29 : memref<!tpu.dma_semaphore, #tpu.memory_space<semaphore_mem>>) src(%arg2 : memref<256x128xf32, #tpu.memory_space<any>>) dst(%arg5 : memref<256x128xf32, #tpu.memory_space<vmem>>)
      %c0_25 = arith.constant 0 : index
      %c0_26 = arith.constant 0 : index
      %30 = vector.load %arg5[%c0_25, %c0_26] : memref<256x128xf32, #tpu.memory_space<vmem>>, vector<256x128xf32>
      %31 = arith.truncf %30 : vector<256x128xf32> to vector<256x128xbf16>
      %c0_27 = arith.constant 0 : index
      %c128_28 = arith.constant 128 : index
      %32 = vector.load %arg7[%c0_27, %c128_28] : memref<256x256xbf16, #tpu.memory_space<vmem>>, vector<256x128xbf16>
      tpu.vector_store %arg7[%c0_27, %c128_28], %31 {strides = array<i32>} : memref<256x256xbf16, #tpu.memory_space<vmem>>, vector<256x128xbf16>,
      %c0_i32_29 = arith.constant 0 : i32
      %33 = tpu.memref_slice %arg8[%c0_i32_29] : memref<2x!tpu.dma_semaphore, #tpu.memory_space<semaphore_mem>> -> memref<1x!tpu.dma_semaphore, #tpu.memory_space<semaphore_mem>>
      %34 = tpu.memref_squeeze %33 : memref<1x!tpu.dma_semaphore, #tpu.memory_space<semaphore_mem>> -> memref<!tpu.dma_semaphore, #tpu.memory_space<semaphore_mem>>
      tpu.wait_dma2 semaphore(%34 : memref<!tpu.dma_semaphore, #tpu.memory_space<semaphore_mem>>) src(%arg1 : memref<256x256xbf16, #tpu.memory_space<any>>) dst(%arg6 : memref<256x256xbf16, #tpu.memory_space<vmem>>)
    } else {
    }
    %c0 = arith.constant 0 : index
    %c0_1 = arith.constant 0 : index
    %3 = vector.load %arg6[%c0, %c0_1] : memref<256x256xbf16, #tpu.memory_space<vmem>>, vector<256x256xbf16>
    %c0_2 = arith.constant 0 : index
    %c128 = arith.constant 128 : index
    %4 = vector.load %arg7[%c0_2, %c128] : memref<256x256xbf16, #tpu.memory_space<vmem>>, vector<256x128xbf16>
    %cst = arith.constant dense<0.000000e+00> : vector<256x128xf32>
    %5 = tpu.matmul %3, %4, %cst {dimension_numbers = #tpu.dot_dimension_numbers<[1], [0], [0], [1], [0, 0, 1, 1], [], []>} : vector<256x256xbf16>, vector<256x128xbf16>, vector<256x128xf32> -> vector<256x128xf32>
    %6 = arith.truncf %5 : vector<256x128xf32> to vector<256x128xbf16>
    %c0_3 = arith.constant 0 : index
    %c0_4 = arith.constant 0 : index
    %7 = vector.load %arg7[%c0_3, %c0_4] : memref<256x256xbf16, #tpu.memory_space<vmem>>, vector<256x128xbf16>
    tpu.vector_store %arg7[%c0_3, %c0_4], %6 {strides = array<i32>} : memref<256x256xbf16, #tpu.memory_space<vmem>>, vector<256x128xbf16>,
    %c0_5 = arith.constant 0 : index
    %c0_6 = arith.constant 0 : index
    %8 = vector.load %arg7[%c0_5, %c0_6] : memref<256x256xbf16, #tpu.memory_space<vmem>>, vector<256x256xbf16>
    %c0_7 = arith.constant 0 : index
    %c0_8 = arith.constant 0 : index
    %c0_9 = arith.constant 0 : index
    %9 = vector.load %arg3[%c0_7, %c0_8, %c0_9] : memref<1x256x128xbf16, #tpu.memory_space<vmem>>, vector<1x256x128xbf16>
    %10 = vector.shape_cast %9 : vector<1x256x128xbf16> to vector<256x128xbf16>
    %cst_10 = arith.constant dense<0.000000e+00> : vector<256x128xf32>
    %11 = tpu.matmul %8, %10, %cst_10 {dimension_numbers = #tpu.dot_dimension_numbers<[1], [0], [0], [1], [0, 0, 1, 1], [], []>} : vector<256x256xbf16>, vector<256x128xbf16>, vector<256x128xf32> -> vector<256x128xf32>
    %c0_11 = arith.constant 0 : index
    %c0_12 = arith.constant 0 : index
    %c0_13 = arith.constant 0 : index
    %12 = vector.load %arg4[%c0_11, %c0_12, %c0_13] : memref<1x1x128xf32, #tpu.memory_space<vmem>>, vector<1x1x128xf32>
    %13 = vector.shape_cast %12 : vector<1x1x128xf32> to vector<1x128xf32>
    %14 = vector.broadcast %13 : vector<1x128xf32> to vector<256x128xf32>
    %15 = arith.addf %11, %14 : vector<256x128xf32>
    %cst_14 = arith.constant 0.000000e+00 : f32
    %16 = vector.broadcast %cst_14 : f32 to vector<256x128xf32>
    %17 = arith.maximumf %15, %16 : vector<256x128xf32>
    %c0_15 = arith.constant 0 : index
    %c0_16 = arith.constant 0 : index
    %18 = vector.load %arg5[%c0_15, %c0_16] : memref<256x128xf32, #tpu.memory_space<vmem>>, vector<256x128xf32>
    %19 = arith.addf %18, %17 : vector<256x128xf32>
    %c0_17 = arith.constant 0 : index
    %c0_18 = arith.constant 0 : index
    %20 = vector.load %arg5[%c0_17, %c0_18] : memref<256x128xf32, #tpu.memory_space<vmem>>, vector<256x128xf32>
    tpu.vector_store %arg5[%c0_17, %c0_18], %19 {strides = array<i32>} : memref<256x128xf32, #tpu.memory_space<vmem>>, vector<256x128xf32>,
    %c0_19 = arith.constant 0 : index
    %c0_20 = arith.constant 0 : index
    %21 = vector.load %arg5[%c0_19, %c0_20] : memref<256x128xf32, #tpu.memory_space<vmem>>, vector<256x128xf32>
    %22 = arith.truncf %21 : vector<256x128xf32> to vector<256x128xbf16>
    %c0_21 = arith.constant 0 : index
    %c128_22 = arith.constant 128 : index
    %23 = vector.load %arg7[%c0_21, %c128_22] : memref<256x256xbf16, #tpu.memory_space<vmem>>, vector<256x128xbf16>
    tpu.vector_store %arg7[%c0_21, %c128_22], %22 {strides = array<i32>} : memref<256x256xbf16, #tpu.memory_space<vmem>>, vector<256x128xbf16>,
    return
  }
  func.func @transform_2(%arg0: i32) -> (i32, i32, i32) {
    %c0_i32 = arith.constant 0 : i32
    %c0_i32_0 = arith.constant 0 : i32
    %c0_i32_1 = arith.constant 0 : i32
    return %arg0, %c0_i32, %c0_i32_0 : i32, i32, i32
  }
  func.func @transform_3(%arg0: i32) -> (i32, i32, i32) {
    %c0_i32 = arith.constant 0 : i32
    %c0_i32_0 = arith.constant 0 : i32
    %c0_i32_1 = arith.constant 0 : i32
    return %arg0, %c0_i32, %c0_i32_0 : i32, i32, i32
  }
  func.func @transform_4(%arg0: i32) -> (i32, i32) {
    %c0_i32 = arith.constant 0 : i32
    %c0_i32_0 = arith.constant 0 : i32
    %c0_i32_1 = arith.constant 0 : i32
    return %c0_i32, %c0_i32_0 : i32, i32
  }
}

</mosaic_0001>

<bundles_post_ra>
// kernel: tpu_custom_call.1
= control target key start
LH: loop header
LB: loop body
LE: loop exit
PB: predicated region body
PF: predicated region fallthrough
CT: control target
= control target key end

     0   :  { %9 = vsyncpa [#allocation6], 0  ;;  %s2705_s0 = inlined_call_operand.hbm [shape: bf16[256,256], index: 0, kind: input, shape index: {}]   ;;  %s2706_s1 = inlined_call_operand.hbm [shape: f32[256,128], index: 1, kind: input, shape index: {}]   ;;  %s2707_s2 = inlined_call_operand.hbm [shape: bf16[3,256,128], index: 2, kind: input, shape index: {}]   ;;  %s2708_s3 = inlined_call_operand.hbm [shape: f32[3,1,128], index: 3, kind: input, shape index: {}]   ;;  %s2709_s4 = inlined_call_operand.hbm [shape: f32[256,128], index: 4, kind: output, shape index: {}]  }
   0x1   :  { %11 = vsyncpa [#allocation6 + $0x1], 0 }
   0x2   :  { %12 = vsyncpa [#allocation9], 0 }
   0x3   :  { %14 = vsyncpa [#allocation9 + $0x1], 0 }
   0x4   :  { %15 = vsyncpa [#allocation7], 0  ;;  %s2474_s15 = smov 0   ;;  %s2476_s16 = smov 0  }
   0x5   :  { %s2478_s17 = smov 0   ;;  %s2480_s18 = smov 0  }
   0x6 LB: > { %s2493_s19 = sadd.s32 4294967295, %s2440_s18   ;;  %s2496_s20 = sadd.s32 1, %s2440_s18   ;;  %s2440_s18 = sphi %s2480_s18, %s2717_s18   ;;  %s2436_s17 = sphi %s2478_s17, %s2716_s17   ;;  %s2432_s16 = sphi %s2476_s16, %s2715_s16   ;;  %s2428_s15 = sphi %s2474_s15, %s2714_s15  }
   0x7   : > { %s25_s21 = ssub.s32 %s2440_s18, %s2496_s20  ;;  %s28_s22 = sadd.s32 1, %s2436_s17 }
   0x8   : > { %p26_p0 = scmp.eq.s32.totalorder %s25_s21, 0  ;;  %p35_p1 = scmp.ne.s32.totalorder %s2436_s17, %s2432_s16 }
   0x9   : > { %p36_p2 = scmp.eq.s32.totalorder %s2440_s18, 0  ;;  %p41_p3 = scmp.ne.s32.totalorder %s2432_s16, %s2428_s15 }
   0xa   : > { %s2506_s23 = scalar_select %p26_p0, %s2436_s17, %s28_s22  }
   0xb   : > { %p2508_p4 = por %p36_p2, %p35_p1  ;;  %p42_p5 = scmp.eq.s32.totalorder %s2493_s19, 0 }
   0xc   : > { %p2215_p6 = scmp.lt.s32.totalorder %s2440_s18, 3  ;;  %s2519_s26 = sand.u32 1, %s2436_s17  }
   0xd   : > { %p2514_p7 = por %p42_p5, %p41_p3  ;;  %s1707_s27 = sshll.u32 %s2519_s26, 7 }
   0xe   : > { %s2103_s28 = sshll.u32 %s2440_s18, 7  ;;  %s116_s6 = scalar_lea.vmem [#allocation5], %s1707_s27 }
   0xf   : > { %s121_s5 = scalar_lea.hbm %s2707_s2, %s2103_s28  ;;  %s124_s7 = sshll.u32 %s116_s6, 4  ;;  %s125_s7 = int_to_ptr.vmem [resolvable:$true] %s124_s7 }
  0x10   : > { %s122_s8 = sshll.u32 %s121_s5, 4  ;;  %p2528_p8 = pnand %p2215_p6, %p2508_p4  ;;  %s123_s8 = int_to_ptr.hbm [resolvable:$true] %s122_s8 }
  0x11   : > { %p1710_p9 = scmp.ge.s32.totalorder %s2440_s18, 1  ;;  %s113_s10 = scalar_lea.sflag [#allocation6], %s2519_s26 }
  0x12   : > { %s2258_s11 = sshra.s32 %s123_s8, 4  ;;  %p2262_p11 = pneg %p2528_p8  ;;  %s2259_s11 = int_to_ptr.hbm [resolvable:$true] %s2258_s11 }
  0x13   : > { %s2260_s12 = scalar_lea.hbm %s2259_s11, 128  ;;  %s2265_s15 = scalar_lea.hbm %s2707_s2, 384 }
  0x14   : > { %p2261_p10 = scmp.ne.s32.totalorder %s2259_s11, %s2260_s12  ;;  %p2266_p0 = scmp.lt.s32.totalorder %s2259_s11, %s2707_s2 }
  0x15   : > { %p2267_p1 = scmp.lt.s32.totalorder %s2265_s15, %s2260_s12 }
  0x16   : > { %p2263_p12 = pnand %p2262_p11, %p2261_p10 }
  0x17   : > { %p2268_p2 = por %p2267_p1, %p2266_p0 }
  0x18   : > { %p2264_p13 = pneg %p2263_p12 }
  0x1a   : > { %p2269_p3 = pnand %p2268_p2, %p2264_p13 }
  0x1c   : > { %2272 = shalt.err (!%p2269_p3)
}
  0x1d   : > { %s2442_s24 = smov 64   ;;  %s2443_s27 = smov 4  }
  0x1e   : > { %2211 = dma.hbm_to_vmem [thread:$0]  (!%p2528_p8), %s123_s8, 2048, %s125_s7, %s113_s10, %s2442_s24, %s2442_s24, %s2443_s27  }
  0x1f   : > { %p149_p4 = scmp.lt.s32.totalorder %s2440_s18, 4  ;;  %s140_s30 = scalar_lea.hbm %s2708_s3, %s2440_s18 }
  0x20   : > { %s142_s6 = sshll.u32 %s140_s30, 4  ;;  %s137_s11 = scalar_lea.vmem [#allocation8], %s2519_s26  ;;  %s143_s6 = int_to_ptr.hbm [resolvable:$true] %s142_s6 }
  0x21   : > { %p2554_p5 = pnand %p1710_p9, %p149_p4  ;;  %s144_s12 = sshll.u32 %s137_s11, 4  ;;  %s145_s12 = int_to_ptr.vmem [resolvable:$true] %s144_s12 }
  0x22   : > { %s135_s13 = scalar_lea.sflag [#allocation9], %s2519_s26  ;;  %s2288_s14 = sshra.s32 %s143_s6, 4  ;;  %s2289_s14 = int_to_ptr.hbm [resolvable:$true] %s2288_s14 }
  0x23   : > { %s2290_s15 = scalar_lea.hbm %s2289_s14, 1  ;;  %s2295_s8 = scalar_lea.hbm %s2708_s3, 3 }
  0x24   : > { %p2291_p6 = scmp.ne.s32.totalorder %s2289_s14, %s2290_s15  ;;  %p2296_p9 = scmp.lt.s32.totalorder %s2289_s14, %s2708_s3 }
  0x25   : > { %p2297_p13 = scmp.lt.s32.totalorder %s2295_s8, %s2290_s15 }
  0x26   : > { %p2293_p10 = pnand %p2291_p6, %p2262_p11 }
  0x27   : > { %p2298_p0 = por %p2297_p13, %p2296_p9 }
  0x28   : > { %p2294_p12 = pneg %p2293_p10 }
  0x2a   : > { %p2299_p1 = pnand %p2298_p0, %p2294_p12 }
  0x2c   : > { %2302 = shalt.err (!%p2299_p1)
}
  0x2d   : > { %2214 = dma.hbm_to_vmem [thread:$0]  (!%p2528_p8), %s143_s6, 16, %s145_s12, %s135_s13  }
  0x2e   : > { %153 = sbr.rel (%p2554_p5) target bundleno = 679 (0x2a7), region = 28  ;;  %s2574_s26 = sand.u32 (!%p2554_p5), 1, %s2432_s16  }
  0x2f   : > { %s1711_s22 = sshll.u32 (!%p2554_p5), %s2574_s26, 7  ;;  %s156_s24 = scalar_lea.sflag (!%p2554_p5), [#allocation6], %s2574_s26 }
  0x30   : > { %s2578_s27 = scalar_lea.vmem (!%p2554_p5), [#allocation5], %s1711_s22 }
  0x33   : > { %2411 = dma.done.wait (%p2514_p7), %s156_s24, 2048  }
  0x34   : > { %2413 = vsyncadd (%p2514_p7), %s156_s24, 4294965248  ;;  %s166_s9 = scalar_lea.sflag [#allocation9], %s2574_s26  ;;  %s168_s28 = scalar_lea.vmem [#allocation8], %s2574_s26 }
  0x35   : > { %2415 = dma.done.wait (%p2514_p7), %s166_s9, 16  }
  0x36   : > { %2417 = vsyncadd (%p2514_p7), %s166_s9, 4294967280  ;;  %p1712_p8 = scmp.ne.s32.totalorder %s2493_s19, 0 }
  0x37   : > { %s200_s5 = sshll.u32 (!%p1712_p8), %s2705_s0, 4  ;;  %s2444_s6 = smov (!%p1712_p8), [#allocation2]   ;;  %s201_s5 = int_to_ptr.hbm [resolvable:$true] %s200_s5 }
  0x38   : > { %192 = sbr.rel (%p1712_p8) target bundleno = 99 (0x63), region = 40  ;;  %s202_s11 = sshll.u32 (!%p1712_p8), %s2444_s6, 4  ;;  %s203_s11 = int_to_ptr.vmem [resolvable:$true] %s202_s11 }
  0x39   : > { %s214_s14 = sshll.u32 (!%p1712_p8), %s2706_s1, 4  ;;  %s2445_s15 = smov (!%p1712_p8), [#allocation10]   ;;  %s215_s14 = int_to_ptr.hbm [resolvable:$true] %s214_s14 }
  0x3a   : > { %205 = dma.hbm_to_vmem [thread:$0]  (!%p1712_p8), %s201_s5, 4096, %s203_s11, [#allocation4] }
  0x3b   : > { %s216_s25 = sshll.u32 (!%p1712_p8), %s2445_s15, 4  ;;  %s217_s25 = int_to_ptr.vmem [resolvable:$true] %s216_s25 }
  0x3c   : > { %219 = dma.hbm_to_vmem [thread:$0]  (!%p1712_p8), %s215_s14, 4096, %s217_s25, [#allocation4 + $0x1] }
  0x3d   : > { %2418 = dma.done.wait [#allocation4 + $0x1], 4096 }
  0x3e   : > { %2419 = vsyncadd [#allocation4 + $0x1], 4294963200  ;;  %v223_v0 = vld [vmem:[#allocation10] sm:$0xff]  ;;  %v224_v1 = vld [vmem:[#allocation10 + $0x8] sm:$0xff] }
  0x3f   : > { %v225_v2 = vld [vmem:[#allocation10 + $0x10] sm:$0xff]  ;;  %v255_v3 = vpack.c.bf16 %v223_v0, %v223_v0  ;;  %v256_v4 = vpack.c.bf16 %v224_v1, %v224_v1  ;;  %v226_v6 = vld [vmem:[#allocation10 + $0x18] sm:$0xff]  ;;  %v227_v7 = vld [vmem:[#allocation10 + $0x20] sm:$0xff] }
  0x40   : > { %v257_v5 = vpack.c.bf16 %v225_v2, %v225_v2  ;;  %v228_v8 = vld [vmem:[#allocation10 + $0x28] sm:$0xff]  ;;  %v258_v9 = vpack.c.bf16 %v226_v6, %v226_v6  ;;  %v229_v10 = vld [vmem:[#allocation10 + $0x30] sm:$0xff]  ;;  %v259_v11 = vpack.c.bf16 %v227_v7, %v227_v7  ;;  %v230_v12 = vld [vmem:[#allocation10 + $0x38] sm:$0xff] }
  0x41   : > { %287 = vst [vmem:[#allocation3 + $0x4] sm:$0xf] %v255_v3  ;;  %v260_v13 = vpack.c.bf16 %v228_v8, %v228_v8  ;;  %v231_v14 = vld [vmem:[#allocation10 + $0x40] sm:$0xff]  ;;  %v261_v15 = vpack.c.bf16 %v229_v10, %v229_v10  ;;  %v232_v16 = vld [vmem:[#allocation10 + $0x48] sm:$0xff]  ;;  %v262_v17 = vpack.c.bf16 %v230_v12, %v230_v12  ;;  %v233_v18 = vld [vmem:[#allocation10 + $0x50] sm:$0xff] }
  0x42   : > { %288 = vst [vmem:[#allocation3 + $0xc] sm:$0xf] %v256_v4  ;;  %v263_v19 = vpack.c.bf16 %v231_v14, %v231_v14  ;;  %v234_v20 = vld [vmem:[#allocation10 + $0x58] sm:$0xff]  ;;  %v264_v21 = vpack.c.bf16 %v232_v16, %v232_v16  ;;  %v235_v22 = vld [vmem:[#allocation10 + $0x60] sm:$0xff]  ;;  %v265_v23 = vpack.c.bf16 %v233_v18, %v233_v18  ;;  %v236_v24 = vld [vmem:[#allocation10 + $0x68] sm:$0xff] }
  0x43   : > { %289 = vst [vmem:[#allocation3 + $0x14] sm:$0xf] %v257_v5  ;;  %v266_v25 = vpack.c.bf16 %v234_v20, %v234_v20  ;;  %v237_v26 = vld [vmem:[#allocation10 + $0x70] sm:$0xff]  ;;  %v267_v27 = vpack.c.bf16 %v235_v22, %v235_v22  ;;  %v238_v28 = vld [vmem:[#allocation10 + $0x78] sm:$0xff]  ;;  %v268_v29 = vpack.c.bf16 %v236_v24, %v236_v24  ;;  %v239_v30 = vld [vmem:[#allocation10 + $0x80] sm:$0xff] }
  0x44   : > { %290 = vst [vmem:[#allocation3 + $0x1c] sm:$0xf] %v258_v9  ;;  %v269_v31 = vpack.c.bf16 %v237_v26, %v237_v26  ;;  %v240_v32 = vld [vmem:[#allocation10 + $0x88] sm:$0xff]  ;;  %v270_v33 = vpack.c.bf16 %v238_v28, %v238_v28  ;;  %v241_v34 = vld [vmem:[#allocation10 + $0x90] sm:$0xff]  ;;  %v271_v35 = vpack.c.bf16 %v239_v30, %v239_v30  ;;  %v242_v36 = vld [vmem:[#allocation10 + $0x98] sm:$0xff] }
  0x45   : > { %291 = vst [vmem:[#allocation3 + $0x24] sm:$0xf] %v259_v11  ;;  %v272_v37 = vpack.c.bf16 %v240_v32, %v240_v32  ;;  %v243_v38 = vld [vmem:[#allocation10 + $0xa0] sm:$0xff]  ;;  %v273_v39 = vpack.c.bf16 %v241_v34, %v241_v34  ;;  %v244_v40 = vld [vmem:[#allocation10 + $0xa8] sm:$0xff]  ;;  %v274_v41 = vpack.c.bf16 %v242_v36, %v242_v36  ;;  %v245_v42 = vld [vmem:[#allocation10 + $0xb0] sm:$0xff] }
  0x46   : > { %292 = vst [vmem:[#allocation3 + $0x2c] sm:$0xf] %v260_v13  ;;  %v275_v43 = vpack.c.bf16 %v243_v38, %v243_v38  ;;  %v246_v44 = vld [vmem:[#allocation10 + $0xb8] sm:$0xff]  ;;  %v276_v45 = vpack.c.bf16 %v244_v40, %v244_v40  ;;  %v247_v46 = vld [vmem:[#allocation10 + $0xc0] sm:$0xff]  ;;  %v277_v47 = vpack.c.bf16 %v245_v42, %v245_v42  ;;  %v248_v48 = vld [vmem:[#allocation10 + $0xc8] sm:$0xff] }
  0x47   : > { %293 = vst [vmem:[#allocation3 + $0x34] sm:$0xf] %v261_v15  ;;  %v278_v49 = vpack.c.bf16 %v246_v44, %v246_v44  ;;  %v249_v50 = vld [vmem:[#allocation10 + $0xd0] sm:$0xff]  ;;  %v279_v51 = vpack.c.bf16 %v247_v46, %v247_v46  ;;  %v250_v52 = vld [vmem:[#allocation10 + $0xd8] sm:$0xff]  ;;  %v280_v53 = vpack.c.bf16 %v248_v48, %v248_v48  ;;  %v251_v54 = vld [vmem:[#allocation10 + $0xe0] sm:$0xff] }
  0x48   : > { %294 = vst [vmem:[#allocation3 + $0x3c] sm:$0xf] %v262_v17  ;;  %v281_v55 = vpack.c.bf16 %v249_v50, %v249_v50  ;;  %v252_v56 = vld [vmem:[#allocation10 + $0xe8] sm:$0xff]  ;;  %v282_v57 = vpack.c.bf16 %v250_v52, %v250_v52  ;;  %v253_v58 = vld [vmem:[#allocation10 + $0xf0] sm:$0xff]  ;;  %v283_v59 = vpack.c.bf16 %v251_v54, %v251_v54  ;;  %v254_v60 = vld [vmem:[#allocation10 + $0xf8] sm:$0xff] }
  0x49   : > { %295 = vst [vmem:[#allocation3 + $0x44] sm:$0xf] %v263_v19  ;;  %v284_v61 = vpack.c.bf16 %v252_v56, %v252_v56  ;;  %v285_v62 = vpack.c.bf16 %v253_v58, %v253_v58  ;;  %v286_v63 = vpack.c.bf16 %v254_v60, %v254_v60 }
  0x4a   : > { %296 = vst [vmem:[#allocation3 + $0x4c] sm:$0xf] %v264_v21 }
  0x4b   : > { %297 = vst [vmem:[#allocation3 + $0x54] sm:$0xf] %v265_v23 }
  0x4c   : > { %298 = vst [vmem:[#allocation3 + $0x5c] sm:$0xf] %v266_v25 }
  0x4d   : > { %299 = vst [vmem:[#allocation3 + $0x64] sm:$0xf] %v267_v27 }
  0x4e   : > { %300 = vst [vmem:[#allocation3 + $0x6c] sm:$0xf] %v268_v29 }
  0x4f   : > { %301 = vst [vmem:[#allocation3 + $0x74] sm:$0xf] %v269_v31 }
  0x50   : > { %302 = vst [vmem:[#allocation3 + $0x7c] sm:$0xf] %v270_v33 }
  0x51   : > { %303 = vst [vmem:[#allocation3 + $0x84] sm:$0xf] %v271_v35 }
  0x52   : > { %304 = vst [vmem:[#allocation3 + $0x8c] sm:$0xf] %v272_v37 }
  0x53   : > { %305 = vst [vmem:[#allocation3 + $0x94] sm:$0xf] %v273_v39 }
  0x54   : > { %306 = vst [vmem:[#allocation3 + $0x9c] sm:$0xf] %v274_v41 }
  0x55   : > { %307 = vst [vmem:[#allocation3 + $0xa4] sm:$0xf] %v275_v43 }
  0x56   : > { %308 = vst [vmem:[#allocation3 + $0xac] sm:$0xf] %v276_v45 }
  0x57   : > { %309 = vst [vmem:[#allocation3 + $0xb4] sm:$0xf] %v277_v47 }
  0x58   : > { %310 = vst [vmem:[#allocation3 + $0xbc] sm:$0xf] %v278_v49 }
  0x59   : > { %311 = vst [vmem:[#allocation3 + $0xc4] sm:$0xf] %v279_v51 }
  0x5a   : > { %312 = vst [vmem:[#allocation3 + $0xcc] sm:$0xf] %v280_v53 }
  0x5b   : > { %313 = vst [vmem:[#allocation3 + $0xd4] sm:$0xf] %v281_v55 }
  0x5c   : > { %314 = vst [vmem:[#allocation3 + $0xdc] sm:$0xf] %v282_v57 }
  0x5d   : > { %315 = vst [vmem:[#allocation3 + $0xe4] sm:$0xf] %v283_v59 }
  0x5e   : > { %316 = vst [vmem:[#allocation3 + $0xec] sm:$0xf] %v284_v61 }
  0x5f   : > { %317 = vst [vmem:[#allocation3 + $0xf4] sm:$0xf] %v285_v62 }
  0x60   : > { %318 = vst [vmem:[#allocation3 + $0xfc] sm:$0xf] %v286_v63 }
  0x61   : > { %2420 = dma.done.wait [#allocation4], 4096 }
  0x62   : > { %2421 = vsyncadd [#allocation4], 4294963200 }
  0x63 PF: > { %s2446_s7 = smov [#allocation10]   ;;  %s1618_s21 = sshll.u32 %s2709_s4, 4  ;;  %s1619_s21 = int_to_ptr.hbm [resolvable:$true] %s1618_s21 }
  0x64   : > { %v1871_v0 = vld [vmem:[#allocation3 + $0x74] sm:$0xf]  ;;  %v2143_v1 = vld [vmem:[#allocation3 + $0x78] sm:$0xf0]  ;;  %v1867_v5 = vld [vmem:[#allocation3 + $0x64] sm:$0xf] }
  0x65   : > { %v1872_v3 = vor.u32 %v2143_v1, %v1871_v0  ;;  %v2142_v6 = vld [vmem:[#allocation3 + $0x68] sm:$0xf0]  ;;  %v1899_v8 = vld [vmem:[#allocation3 + $0xe4] sm:$0xf]  ;;  %v1863_v12 = vld [vmem:[#allocation3 + $0x54] sm:$0xf] }
  0x66   : > { %v1903_v2 = vld [vmem:[#allocation3 + $0xf4] sm:$0xf]  ;;  %v2150_v9 = vld [vmem:[#allocation3 + $0xe8] sm:$0xf0]  ;;  %v1868_v10 = vor.u32 %v2142_v6, %v1867_v5  ;;  %v2141_v13 = vld [vmem:[#allocation3 + $0x58] sm:$0xf0] }
  0x67   : > { %v2151_v4 = vld [vmem:[#allocation3 + $0xf8] sm:$0xf0]  ;;  %643 = vmatpush.bf16.msra.mxu0 %v1872_v3  ;;  %v1900_v11 = vor.u32 %v2150_v9, %v1899_v8  ;;  %v1895_v14 = vld [vmem:[#allocation3 + $0xd4] sm:$0xf]  ;;  %v1864_v16 = vor.u32 %v2141_v13, %v1863_v12  ;;  %v1859_v18 = vld [vmem:[#allocation3 + $0x44] sm:$0xf] }
  0x68   : > { %v1904_v7 = vor.u32 %v2151_v4, %v1903_v2  ;;  %v2149_v15 = vld [vmem:[#allocation3 + $0xd8] sm:$0xf0]  ;;  %v2140_v19 = vld [vmem:[#allocation3 + $0x48] sm:$0xf0]  ;;  %v1891_v20 = vld [vmem:[#allocation3 + $0xc4] sm:$0xf] }
  0x69   : > { %v1896_v17 = vor.u32 %v2149_v15, %v1895_v14  ;;  %v2148_v21 = vld [vmem:[#allocation3 + $0xc8] sm:$0xf0]  ;;  %v1860_v22 = vor.u32 %v2140_v19, %v1859_v18  ;;  %v1855_v24 = vld [vmem:[#allocation3 + $0x34] sm:$0xf]  ;;  %v2139_v25 = vld [vmem:[#allocation3 + $0x38] sm:$0xf0] }
  0x6a   : > { %732 = vmatpush.bf16.msra.mxu1 %v1904_v7  ;;  %v1892_v23 = vor.u32 %v2148_v21, %v1891_v20  ;;  %v1887_v26 = vld [vmem:[#allocation3 + $0xb4] sm:$0xf]  ;;  %v2147_v27 = vld [vmem:[#allocation3 + $0xb8] sm:$0xf0]  ;;  %v1856_v28 = vor.u32 %v2139_v25, %v1855_v24  ;;  %v1851_v30 = vld [vmem:[#allocation3 + $0x24] sm:$0xf] }
  0x6b   : > { %644 = vmatpush.bf16.msra.mxu0 %v1868_v10  ;;  %v1888_v29 = vor.u32 %v2147_v27, %v1887_v26  ;;  %v2138_v31 = vld [vmem:[#allocation3 + $0x28] sm:$0xf0]  ;;  %v1883_v32 = vld [vmem:[#allocation3 + $0xa4] sm:$0xf]  ;;  %v1847_v36 = vld [vmem:[#allocation3 + $0x14] sm:$0xf] }
  0x6c   : > { %v2146_v33 = vld [vmem:[#allocation3 + $0xa8] sm:$0xf0]  ;;  %v1852_v34 = vor.u32 %v2138_v31, %v1851_v30  ;;  %v2137_v37 = vld [vmem:[#allocation3 + $0x18] sm:$0xf0]  ;;  %v1879_v38 = vld [vmem:[#allocation3 + $0x94] sm:$0xf] }
  0x6d   : > { %v1884_v35 = vor.u32 %v2146_v33, %v1883_v32  ;;  %v2145_v39 = vld [vmem:[#allocation3 + $0x98] sm:$0xf0]  ;;  %v1848_v40 = vor.u32 %v2137_v37, %v1847_v36  ;;  %v1843_v42 = vld [vmem:[#allocation3 + $0x4] sm:$0xf]  ;;  %v2136_v43 = vld [vmem:[#allocation3 + $0x8] sm:$0xf0] }
  0x6e   : > { %733 = vmatpush.bf16.msra.mxu1 %v1900_v11  ;;  %v1880_v41 = vor.u32 %v2145_v39, %v1879_v38  ;;  %v1875_v44 = vld [vmem:[#allocation3 + $0x84] sm:$0xf]  ;;  %v2144_v45 = vld [vmem:[#allocation3 + $0x88] sm:$0xf0]  ;;  %v1844_v46 = vor.u32 %v2136_v43, %v1843_v42  ;;  %v1715_v47 = vld [vmem:[#allocation2] sm:$0xf] }
  0x6f   : > { %645 = vmatpush.bf16.msra.mxu0 %v1864_v16  ;;  %v2105_v48 = vld [vmem:[#allocation2 + $0x4] sm:$0xf0]  ;;  %v1876_v49 = vor.u32 %v2144_v45, %v1875_v44  ;;  %v2104_v50 = vld [vmem:[#allocation2 + $0x4] sm:$0xf]  ;;  %v1717_v51 = vld [vmem:[#allocation2 + $0x8] sm:$0xf0] }
  0x70   : > { %v1716_v52 = vor.u32 %v2105_v48, %v1715_v47  ;;  %v1720_v53 = vor.u32 %v2104_v50, %v1717_v51  ;;  %v1723_v54 = vld [vmem:[#allocation2 + $0x10] sm:$0xf]  ;;  %v2107_v55 = vld [vmem:[#allocation2 + $0x14] sm:$0xf0]  ;;  %v2106_v56 = vld [vmem:[#allocation2 + $0x14] sm:$0xf] }
  0x71   : > { %v1725_v57 = vld [vmem:[#allocation2 + $0x18] sm:$0xf0]  ;;  %v1724_v58 = vor.u32 %v2107_v55, %v1723_v54  ;;  %v1731_v60 = vld [vmem:[#allocation2 + $0x20] sm:$0xf]  ;;  %v2109_v61 = vld [vmem:[#allocation2 + $0x24] sm:$0xf0] }
  0x72   : > { %734 = vmatpush.bf16.msra.mxu1 %v1896_v17  ;;  %v1728_v59 = vor.u32 %v2106_v56, %v1725_v57  ;;  %v2108_v62 = vld [vmem:[#allocation2 + $0x24] sm:$0xf]  ;;  %v1733_v63 = vld [vmem:[#allocation2 + $0x28] sm:$0xf0]  ;;  %v1732_v0 = vor.u32 %v2109_v61, %v1731_v60  ;;  %v1739_v2 = vld [vmem:[#allocation2 + $0x30] sm:$0xf] }
  0x73   : > { %646 = vmatpush.bf16.msra.mxu0 %v1860_v22  ;;  %v1736_v1 = vor.u32 %v2108_v62, %v1733_v63  ;;  %v2111_v3 = vld [vmem:[#allocation2 + $0x34] sm:$0xf0]  ;;  %v2110_v4 = vld [vmem:[#allocation2 + $0x34] sm:$0xf]  ;;  %v1741_v5 = vld [vmem:[#allocation2 + $0x38] sm:$0xf0] }
  0x74   : > { %v1740_v6 = vor.u32 %v2111_v3, %v1739_v2  ;;  %v1744_v7 = vor.u32 %v2110_v4, %v1741_v5  ;;  %v1747_v8 = vld [vmem:[#allocation2 + $0x40] sm:$0xf]  ;;  %v2113_v9 = vld [vmem:[#allocation2 + $0x44] sm:$0xf0]  ;;  %v2112_v10 = vld [vmem:[#allocation2 + $0x44] sm:$0xf] }
  0x75   : > { %v1749_v11 = vld [vmem:[#allocation2 + $0x48] sm:$0xf0]  ;;  %v1748_v12 = vor.u32 %v2113_v9, %v1747_v8  ;;  %v2199_v14 = vld [vmem:[%s2578_s27 + $0x78] sm:$0xff]  ;;  %v1755_v15 = vld [vmem:[#allocation2 + $0x50] sm:$0xf]  ;;  %s1616_s18 = sshll.u32 %s2446_s7, 4  ;;  %s1617_s18 = int_to_ptr.vmem [resolvable:$true] %s1616_s18 }
  0x76   : > { %735 = vmatpush.bf16.msra.mxu1 %v1892_v23  ;;  %v1752_v13 = vor.u32 %v2112_v10, %v1749_v11  ;;  %1298 = vmatpush.bf16.msra.mxu3 %v2199_v14  ;;  %v2115_v16 = vld [vmem:[#allocation2 + $0x54] sm:$0xf0]  ;;  %v2114_v17 = vld [vmem:[#allocation2 + $0x54] sm:$0xf]  ;;  %v1757_v18 = vld [vmem:[#allocation2 + $0x58] sm:$0xf0] }
  0x77   : > { %647 = vmatpush.bf16.msra.mxu0 %v1856_v28  ;;  %v1756_v19 = vor.u32 %v2115_v16, %v1755_v15  ;;  %v1760_v20 = vor.u32 %v2114_v17, %v1757_v18  ;;  %v2198_v21 = vld [vmem:[%s2578_s27 + $0x70] sm:$0xff]  ;;  %v2191_v22 = vld [vmem:[%s2578_s27 + $0x38] sm:$0xff]  ;;  %v2197_v23 = vld [vmem:[%s2578_s27 + $0x68] sm:$0xff]  ;;  %p2216_p7 = scmp.eq.s32.totalorder %s2493_s19, 2  ;;  %s2447_s26 = smov 128  }
  0x78   : > { %1209 = vmatpush.bf16.msra.mxu2 %v2191_v22  ;;  %v2190_v24 = vld [vmem:[%s2578_s27 + $0x30] sm:$0xff]  ;;  %v2196_v25 = vld [vmem:[%s2578_s27 + $0x60] sm:$0xff]  ;;  %v2117_v27 = vld [vmem:[#allocation2 + $0x64] sm:$0xf0]  ;;  %s2448_s22 = smov 8  }
  0x79   : > { %v1763_v26 = vld [vmem:[#allocation2 + $0x60] sm:$0xf]  ;;  %v2116_v28 = vld [vmem:[#allocation2 + $0x64] sm:$0xf]  ;;  %v2189_v31 = vld [vmem:[%s2578_s27 + $0x28] sm:$0xff] }
  0x7a   : > { %736 = vmatpush.bf16.msra.mxu1 %v1888_v29  ;;  %1299 = vmatpush.bf16.msra.mxu3 %v2198_v21  ;;  %v1765_v29 = vld [vmem:[#allocation2 + $0x68] sm:$0xf0]  ;;  %v1764_v30 = vor.u32 %v2117_v27, %v1763_v26  ;;  %v2195_v33 = vld [vmem:[%s2578_s27 + $0x58] sm:$0xff]  ;;  %v2186_v38 = vld [vmem:[%s2578_s27 + $0x10] sm:$0xff] }
  0x7b   : > { %648 = vmatpush.bf16.msra.mxu0 %v1852_v34  ;;  %v1768_v32 = vor.u32 %v2116_v28, %v1765_v29  ;;  %v2188_v34 = vld [vmem:[%s2578_s27 + $0x20] sm:$0xff]  ;;  %v2187_v36 = vld [vmem:[%s2578_s27 + $0x18] sm:$0xff]  ;;  %v2193_v37 = vld [vmem:[%s2578_s27 + $0x48] sm:$0xff] }
  0x7c   : > { %1210 = vmatpush.bf16.msra.mxu2 %v2190_v24  ;;  %v1771_v39 = vld [vmem:[#allocation2 + $0x70] sm:$0xf]  ;;  %v1773_v42 = vld [vmem:[#allocation2 + $0x78] sm:$0xf0]  ;;  %v2192_v43 = vld [vmem:[%s2578_s27 + $0x40] sm:$0xff] }
  0x7d   : > { %v2185_v45 = vld [vmem:[%s2578_s27 + $0x8] sm:$0xff]  ;;  %v2184_v50 = vld [vmem:[%s2578_s27] sm:$0xff]  ;;  %v2154_v56 = vld [vmem:[#allocation3 + $0x14] sm:$0xf] }
  0x7e   : > { %737 = vmatpush.bf16.msra.mxu1 %v1884_v35  ;;  %1300 = vmatpush.bf16.msra.mxu3 %v2197_v23  ;;  %v2194_v35 = vld [vmem:[%s2578_s27 + $0x50] sm:$0xff]  ;;  %v1909_v47 = vld [vmem:[#allocation3 + $0x8] sm:$0xf0]  ;;  %v1779_v51 = vld [vmem:[#allocation2 + $0x80] sm:$0xf] }
  0x7f   : > { %649 = vmatpush.bf16.msra.mxu0 %v1848_v40  ;;  %v2119_v40 = vld [vmem:[#allocation2 + $0x74] sm:$0xf0]  ;;  %v1781_v54 = vld [vmem:[#allocation2 + $0x88] sm:$0xf0]  ;;  %v1917_v57 = vld [vmem:[#allocation3 + $0x18] sm:$0xf0] }
  0x80   : > { %1211 = vmatpush.bf16.msra.mxu2 %v2189_v31  ;;  %v1772_v44 = vor.u32 %v2119_v40, %v1771_v39  ;;  %v1920_v60 = vor.u32 %v2154_v56, %v1917_v57  ;;  %v1787_v4 = vld [vmem:[#allocation2 + $0x90] sm:$0xf]  ;;  %v2123_v5 = vld [vmem:[#allocation2 + $0x94] sm:$0xf0]  ;;  %v2156_v9 = vld [vmem:[#allocation3 + $0x24] sm:$0xf] }
  0x81   : > { %v1788_v8 = vor.u32 %v2123_v5, %v1787_v4  ;;  %v1925_v10 = vld [vmem:[#allocation3 + $0x28] sm:$0xf0]  ;;  %v1795_v24 = vld [vmem:[#allocation2 + $0xa0] sm:$0xf]  ;;  %v2124_v26 = vld [vmem:[#allocation2 + $0xa4] sm:$0xf] }
  0x82   : > { %738 = vmatpush.bf16.msra.mxu1 %v1880_v41  ;;  %1301 = vmatpush.bf16.msra.mxu3 %v2196_v25  ;;  %v2118_v41 = vld [vmem:[#allocation2 + $0x74] sm:$0xf]  ;;  %v2125_v25 = vld [vmem:[#allocation2 + $0xa4] sm:$0xf0]  ;;  %v1797_v27 = vld [vmem:[#allocation2 + $0xa8] sm:$0xf0] }
  0x83   : > { %650 = vmatpush.bf16.msra.mxu0 %v1844_v46  ;;  %v2152_v46 = vld [vmem:[#allocation3 + $0x4] sm:$0xf]  ;;  %v1776_v48 = vor.u32 %v2118_v41, %v1773_v42  ;;  %v1796_v28 = vor.u32 %v2125_v25, %v1795_v24  ;;  %v2158_v29 = vld [vmem:[#allocation3 + $0x34] sm:$0xf] }
  0x84   : > { %1212 = vmatpush.bf16.msra.mxu2 %v2188_v34  ;;  %v2162_v5 = vld [vmem:[#allocation3 + $0x54] sm:$0xf]  ;;  %v2164_v25 = vld [vmem:[#allocation3 + $0x64] sm:$0xf] }
  0x86   : > { %739 = vmatpush.bf16.msra.mxu1 %v1876_v49  ;;  %651 = vmatmul.bf16.vlgmr.msra.gmra.mxu0 %v1716_v52  ;;  %v1912_v49 = vor.u32 %v2152_v46, %v1909_v47  ;;  %v2121_v52 = vld [vmem:[#allocation2 + $0x84] sm:$0xf0]  ;;  %v2126_v46 = vld [vmem:[#allocation2 + $0xb4] sm:$0xf]  ;;  %v1805_v47 = vld [vmem:[#allocation2 + $0xb8] sm:$0xf0] }
  0x87   : > { %1302 = vmatpush.bf16.msra.mxu3 %v2195_v33  ;;  %v1780_v55 = vor.u32 %v2121_v52, %v1779_v51  ;;  %v1808_v52 = vor.u32 %v2126_v46, %v1805_v47  ;;  %v1965_v46 = vld [vmem:[#allocation3 + $0x78] sm:$0xf0] }
  0x88   : > { %1213 = vmatpush.bf16.msra.mxu2 %v2187_v36 }
  0x89   : > { %740 = vmatmul.bf16.vlgmr.msra.gmra.mxu1 %v1720_v53  ;;  %v2120_v53 = vld [vmem:[#allocation2 + $0x84] sm:$0xf] }
  0x8b   : > { %1303 = vmatpush.bf16.msra.mxu3 %v2194_v35 }
  0x8c   : > { %1214 = vmatpush.bf16.msra.mxu2 %v2186_v38 }
  0x8f   : > { %1304 = vmatpush.bf16.msra.mxu3 %v2193_v37 }
  0x90   : > { %1215 = vmatpush.bf16.msra.mxu2 %v2185_v45  ;;  %v2127_v45 = vld [vmem:[#allocation2 + $0xb4] sm:$0xf0] }
  0x93   : > { %1305 = vmatpush.bf16.msra.mxu3 %v2192_v43 }
  0x94   : > { %1216 = vmatpush.bf16.msra.mxu2 %v2184_v50  ;;  %v1941_v50 = vld [vmem:[#allocation3 + $0x48] sm:$0xf0] }
  0x96   : > { %656 = vmatmul.bf16.gmra.mxu0 %v1724_v58  ;;  %1306 = vmatmul.bf16.vlgmr.msra.gmra.mxu3 %v1912_v49  ;;  %v2160_v49 = vld [vmem:[#allocation3 + $0x44] sm:$0xf] }
  0x99   : > { %745 = vmatmul.bf16.gmra.mxu1 %v1728_v59  ;;  %v1784_v59 = vor.u32 %v2120_v53, %v1781_v54  ;;  %v1944_v53 = vor.u32 %v2160_v49, %v1941_v50 }
  0xa6   : > { %661 = vmatmul.bf16.gmra.mxu0 %v1732_v0  ;;  %1311 = vmatmul.bf16.gmra.mxu3 %v1920_v60 }
  0xa9   : > { %750 = vmatmul.bf16.gmra.mxu1 %v1736_v1 }
  0xb6   : > { %666 = vmatmul.bf16.gmra.mxu0 %v1740_v6  ;;  %v2122_v6 = vld [vmem:[#allocation2 + $0x94] sm:$0xf] }
  0xb9   : > { %755 = vmatmul.bf16.gmra.mxu1 %v1744_v7  ;;  %v1789_v7 = vld [vmem:[#allocation2 + $0x98] sm:$0xf0] }
  0xc6   : > { %671 = vmatmul.bf16.gmra.mxu0 %v1748_v12  ;;  %v1792_v12 = vor.u32 %v2122_v6, %v1789_v7  ;;  %v1949_v6 = vld [vmem:[#allocation3 + $0x58] sm:$0xf0] }
  0xc9   : > { %760 = vmatmul.bf16.gmra.mxu1 %v1752_v13  ;;  %v1928_v13 = vor.u32 %v2156_v9, %v1925_v10  ;;  %v1952_v9 = vor.u32 %v2162_v5, %v1949_v6 }
  0xcb   : > { %1316 = vmatmul.bf16.gmra.mxu3 %v1928_v13 }
  0xd6   : > { %676 = vmatmul.bf16.gmra.mxu0 %v1756_v19 }
  0xd9   : > { %765 = vmatmul.bf16.gmra.mxu1 %v1760_v20 }
  0xe6   : > { %681 = vmatmul.bf16.gmra.mxu0 %v1764_v30  ;;  %v1933_v30 = vld [vmem:[#allocation3 + $0x38] sm:$0xf0] }
  0xe7   : > { %v1936_v33 = vor.u32 %v2158_v29, %v1933_v30 }
  0xe9   : > { %770 = vmatmul.bf16.gmra.mxu1 %v1768_v32  ;;  %v1800_v32 = vor.u32 %v2124_v26, %v1797_v27  ;;  %1321 = vmatmul.bf16.gmra.mxu3 %v1936_v33  ;;  %v1957_v26 = vld [vmem:[#allocation3 + $0x68] sm:$0xf0] }
  0xea   : > { %v1960_v29 = vor.u32 %v2164_v25, %v1957_v26 }
  0xf6   : > { %686 = vmatmul.bf16.gmra.mxu0 %v1772_v44  ;;  %v1803_v44 = vld [vmem:[#allocation2 + $0xb0] sm:$0xf] }
  0xf9   : > { %775 = vmatmul.bf16.gmra.mxu1 %v1776_v48  ;;  %v1804_v48 = vor.u32 %v2127_v45, %v1803_v44  ;;  %1326 = vmatmul.bf16.gmra.mxu3 %v1944_v53  ;;  %v2166_v45 = vld [vmem:[#allocation3 + $0x74] sm:$0xf] }
  0xfa   : > { %v1968_v49 = vor.u32 %v2166_v45, %v1965_v46  ;;  %v2623_v46 = vld [vmem:[%s168_s28] ss:$0 sm:$0xff] }
 0x103   : > { %v652_v58 = vpop.f32.mrf.mxu0 }
 0x106   : > { %v741_v61 = vpop.f32.mrf.mxu1  ;;  %691 = vmatmul.bf16.gmra.mxu0 %v1780_v55 }
 0x107   : > { %v742_v62 = vadd.f32 %v741_v61, %v652_v58 }
 0x109   : > { %v821_v63 = vpack.c.bf16 %v742_v62, %v742_v62  ;;  %780 = vmatmul.bf16.gmra.mxu1 %v1784_v59  ;;  %1331 = vmatmul.bf16.gmra.mxu3 %v1952_v9 }
 0x10b   : > { %853 = vst [vmem:[#allocation3] sm:$0xf] %v821_v63  ;;  %v654_v0 = vpop.f32.mrf.mxu0 }
 0x10e   : > { %v743_v1 = vpop.f32.mrf.mxu1 }
 0x10f   : > { %v744_v2 = vadd.f32 %v743_v1, %v654_v0  ;;  %v1811_v0 = vld [vmem:[#allocation2 + $0xc0] sm:$0xf]  ;;  %v2129_v1 = vld [vmem:[#allocation2 + $0xc4] sm:$0xf0] }
 0x110   : > { %v1812_v4 = vor.u32 %v2129_v1, %v1811_v0  ;;  %v2168_v1 = vld [vmem:[#allocation3 + $0x84] sm:$0xf] }
 0x111   : > { %v822_v3 = vpack.c.bf16 %v744_v2, %v744_v2  ;;  %v2128_v2 = vld [vmem:[#allocation2 + $0xc4] sm:$0xf] }
 0x112   : > { %v1907_v17 = vld [vmem:[#allocation3] sm:$0xf] }
 0x113   : > { %854 = vst [vmem:[#allocation3 + $0x8] sm:$0xf] %v822_v3  ;;  %v657_v11 = vpop.f32.mrf.mxu0  ;;  %v1813_v3 = vld [vmem:[#allocation2 + $0xc8] sm:$0xf0] }
 0x116   : > { %v746_v14 = vpop.f32.mrf.mxu1  ;;  %696 = vmatmul.bf16.gmra.mxu0 %v1788_v8  ;;  %v1816_v8 = vor.u32 %v2128_v2, %v1813_v3  ;;  %v1973_v2 = vld [vmem:[#allocation3 + $0x88] sm:$0xf0] }
 0x117   : > { %v747_v15 = vadd.f32 %v746_v14, %v657_v11  ;;  %v1976_v5 = vor.u32 %v2168_v1, %v1973_v2 }
 0x119   : > { %v823_v16 = vpack.c.bf16 %v747_v15, %v747_v15  ;;  %785 = vmatmul.bf16.gmra.mxu1 %v1792_v12  ;;  %1336 = vmatmul.bf16.gmra.mxu3 %v1960_v29 }
 0x11a   : > { %v2153_v18 = vld [vmem:[#allocation3 + $0x4] sm:$0xf0] }
 0x11b   : > { %855 = vst [vmem:[#allocation3 + $0x10] sm:$0xf] %v823_v16  ;;  %v1908_v19 = vor.u32 %v2153_v18, %v1907_v17  ;;  %v659_v20 = vpop.f32.mrf.mxu0 }
 0x11d   : > { %1217 = vmatmul.bf16.vlgmr.msra.gmra.mxu2 %v1908_v19 }
 0x11e   : > { %v748_v21 = vpop.f32.mrf.mxu1 }
 0x11f   : > { %v749_v22 = vadd.f32 %v748_v21, %v659_v20  ;;  %v1819_v20 = vld [vmem:[#allocation2 + $0xd0] sm:$0xf]  ;;  %v2131_v21 = vld [vmem:[#allocation2 + $0xd4] sm:$0xf0] }
 0x120   : > { %v1820_v24 = vor.u32 %v2131_v21, %v1819_v20  ;;  %v1981_v20 = vld [vmem:[#allocation3 + $0x98] sm:$0xf0] }
 0x121   : > { %v824_v23 = vpack.c.bf16 %v749_v22, %v749_v22  ;;  %v2130_v22 = vld [vmem:[#allocation2 + $0xd4] sm:$0xf] }
 0x122   : > { %v1915_v37 = vld [vmem:[#allocation3 + $0x10] sm:$0xf] }
 0x123   : > { %856 = vst [vmem:[#allocation3 + $0x18] sm:$0xf] %v824_v23  ;;  %v662_v31 = vpop.f32.mrf.mxu0  ;;  %v1821_v23 = vld [vmem:[#allocation2 + $0xd8] sm:$0xf0] }
 0x126   : > { %v751_v34 = vpop.f32.mrf.mxu1  ;;  %701 = vmatmul.bf16.gmra.mxu0 %v1796_v28  ;;  %v1824_v28 = vor.u32 %v2130_v22, %v1821_v23 }
 0x127   : > { %v752_v35 = vadd.f32 %v751_v34, %v662_v31 }
 0x129   : > { %v825_v36 = vpack.c.bf16 %v752_v35, %v752_v35  ;;  %790 = vmatmul.bf16.gmra.mxu1 %v1800_v32  ;;  %1341 = vmatmul.bf16.gmra.mxu3 %v1968_v49 }
 0x12a   : > { %v2155_v38 = vld [vmem:[#allocation3 + $0x14] sm:$0xf0] }
 0x12b   : > { %857 = vst [vmem:[#allocation3 + $0x20] sm:$0xf] %v825_v36  ;;  %v1916_v39 = vor.u32 %v2155_v38, %v1915_v37  ;;  %v664_v40 = vpop.f32.mrf.mxu0 }
 0x12d   : > { %1222 = vmatmul.bf16.gmra.mxu2 %v1916_v39 }
 0x12e   : > { %v753_v41 = vpop.f32.mrf.mxu1 }
 0x12f   : > { %v754_v42 = vadd.f32 %v753_v41, %v664_v40  ;;  %v1827_v40 = vld [vmem:[#allocation2 + $0xe0] sm:$0xf]  ;;  %v2133_v41 = vld [vmem:[#allocation2 + $0xe4] sm:$0xf0] }
 0x130   : > { %v1828_v44 = vor.u32 %v2133_v41, %v1827_v40 }
 0x131   : > { %v826_v43 = vpack.c.bf16 %v754_v42, %v754_v42  ;;  %v2132_v42 = vld [vmem:[#allocation2 + $0xe4] sm:$0xf] }
 0x132   : > { %v1923_v57 = vld [vmem:[#allocation3 + $0x20] sm:$0xf] }
 0x133   : > { %858 = vst [vmem:[#allocation3 + $0x28] sm:$0xf] %v826_v43  ;;  %v667_v51 = vpop.f32.mrf.mxu0  ;;  %v1829_v43 = vld [vmem:[#allocation2 + $0xe8] sm:$0xf0] }
 0x136   : > { %v756_v54 = vpop.f32.mrf.mxu1  ;;  %706 = vmatmul.bf16.gmra.mxu0 %v1804_v48  ;;  %v1832_v48 = vor.u32 %v2132_v42, %v1829_v43 }
 0x137   : > { %v757_v55 = vadd.f32 %v756_v54, %v667_v51 }
 0x139   : > { %v827_v56 = vpack.c.bf16 %v757_v55, %v757_v55  ;;  %795 = vmatmul.bf16.gmra.mxu1 %v1808_v52  ;;  %1346 = vmatmul.bf16.gmra.mxu3 %v1976_v5 }
 0x13a   : > { %v2157_v58 = vld [vmem:[#allocation3 + $0x24] sm:$0xf0] }
 0x13b   : > { %859 = vst [vmem:[#allocation3 + $0x30] sm:$0xf] %v827_v56  ;;  %v1924_v59 = vor.u32 %v2157_v58, %v1923_v57  ;;  %v669_v60 = vpop.f32.mrf.mxu0 }
 0x13d   : > { %1227 = vmatmul.bf16.gmra.mxu2 %v1924_v59 }
 0x13e   : > { %v758_v61 = vpop.f32.mrf.mxu1 }
 0x13f   : > { %v759_v62 = vadd.f32 %v758_v61, %v669_v60  ;;  %v1835_v60 = vld [vmem:[#allocation2 + $0xf0] sm:$0xf]  ;;  %v2135_v61 = vld [vmem:[#allocation2 + $0xf4] sm:$0xf0] }
 0x140   : > { %v1836_v0 = vor.u32 %v2135_v61, %v1835_v60 }
 0x141   : > { %v828_v63 = vpack.c.bf16 %v759_v62, %v759_v62  ;;  %v2134_v62 = vld [vmem:[#allocation2 + $0xf4] sm:$0xf] }
 0x142   : > { %v1931_v13 = vld [vmem:[#allocation3 + $0x30] sm:$0xf] }
 0x143   : > { %860 = vst [vmem:[#allocation3 + $0x38] sm:$0xf] %v828_v63  ;;  %v672_v7 = vpop.f32.mrf.mxu0  ;;  %v1837_v63 = vld [vmem:[#allocation2 + $0xf8] sm:$0xf0] }
 0x146   : > { %v761_v10 = vpop.f32.mrf.mxu1  ;;  %711 = vmatmul.bf16.gmra.mxu0 %v1812_v4  ;;  %v1840_v4 = vor.u32 %v2134_v62, %v1837_v63 }
 0x147   : > { %v762_v11 = vadd.f32 %v761_v10, %v672_v7 }
 0x149   : > { %v829_v12 = vpack.c.bf16 %v762_v11, %v762_v11  ;;  %800 = vmatmul.bf16.gmra.mxu1 %v1816_v8  ;;  %v1307_v11 = vpop.f32.mrf.mxu3 }
 0x14a   : > { %v2159_v14 = vld [vmem:[#allocation3 + $0x34] sm:$0xf0] }
 0x14b   : > { %861 = vst [vmem:[#allocation3 + $0x40] sm:$0xf] %v829_v12  ;;  %v1932_v15 = vor.u32 %v2159_v14, %v1931_v13  ;;  %v674_v16 = vpop.f32.mrf.mxu0 }
 0x14d   : > { %1232 = vmatmul.bf16.gmra.mxu2 %v1932_v15 }
 0x14e   : > { %v763_v17 = vpop.f32.mrf.mxu1 }
 0x14f   : > { %v764_v18 = vadd.f32 %v763_v17, %v674_v16 }
 0x151   : > { %v830_v19 = vpack.c.bf16 %v764_v18, %v764_v18  ;;  %v2613_v17 = vpop.f32.mrf.mxu3 }
 0x152   : > { %v1939_v33 = vld [vmem:[#allocation3 + $0x40] sm:$0xf] }
 0x153   : > { %862 = vst [vmem:[#allocation3 + $0x48] sm:$0xf] %v830_v19  ;;  %v677_v27 = vpop.f32.mrf.mxu0  ;;  %v2170_v19 = vld [vmem:[#allocation3 + $0x94] sm:$0xf] }
 0x154   : > { %v1984_v22 = vor.u32 %v2170_v19, %v1981_v20  ;;  %v1421_v20 = vld [vmem:[#allocation10 + $0x10] sm:$0xff] }
 0x156   : > { %v766_v30 = vpop.f32.mrf.mxu1  ;;  %716 = vmatmul.bf16.gmra.mxu0 %v1820_v24  ;;  %1351 = vmatmul.bf16.gmra.mxu3 %v1984_v22 }
 0x157   : > { %v767_v31 = vadd.f32 %v766_v30, %v677_v27 }
 0x159   : > { %v831_v32 = vpack.c.bf16 %v767_v31, %v767_v31  ;;  %805 = vmatmul.bf16.gmra.mxu1 %v1824_v28  ;;  %v2615_v28 = vpop.f32.mrf.mxu3 }
 0x15a   : > { %v2161_v34 = vld [vmem:[#allocation3 + $0x44] sm:$0xf0] }
 0x15b   : > { %863 = vst [vmem:[#allocation3 + $0x50] sm:$0xf] %v831_v32  ;;  %v1940_v35 = vor.u32 %v2161_v34, %v1939_v33  ;;  %v679_v36 = vpop.f32.mrf.mxu0 }
 0x15d   : > { %1237 = vmatmul.bf16.gmra.mxu2 %v1940_v35  ;;  %v2172_v35 = vld [vmem:[#allocation3 + $0xa4] sm:$0xf] }
 0x15e   : > { %v768_v37 = vpop.f32.mrf.mxu1 }
 0x15f   : > { %v769_v38 = vadd.f32 %v768_v37, %v679_v36  ;;  %v1989_v36 = vld [vmem:[#allocation3 + $0xa8] sm:$0xf0] }
 0x161   : > { %v832_v39 = vpack.c.bf16 %v769_v38, %v769_v38  ;;  %v2617_v33 = vpop.f32.mrf.mxu3  ;;  %v1992_v38 = vor.u32 %v2172_v35, %v1989_v36 }
 0x162   : > { %v1947_v53 = vld [vmem:[#allocation3 + $0x50] sm:$0xf] }
 0x163   : > { %864 = vst [vmem:[#allocation3 + $0x58] sm:$0xf] %v832_v39  ;;  %v682_v47 = vpop.f32.mrf.mxu0 }
 0x166   : > { %v771_v50 = vpop.f32.mrf.mxu1  ;;  %721 = vmatmul.bf16.gmra.mxu0 %v1828_v44  ;;  %1356 = vmatmul.bf16.gmra.mxu3 %v1992_v38  ;;  %v1422_v38 = vld [vmem:[#allocation10 + $0x18] sm:$0xff] }
 0x167   : > { %v772_v51 = vadd.f32 %v771_v50, %v682_v47 }
 0x169   : > { %v833_v52 = vpack.c.bf16 %v772_v51, %v772_v51  ;;  %810 = vmatmul.bf16.gmra.mxu1 %v1832_v48  ;;  %v2619_v44 = vpop.f32.mrf.mxu3 }
 0x16a   : > { %v2163_v54 = vld [vmem:[#allocation3 + $0x54] sm:$0xf0] }
 0x16b   : > { %865 = vst [vmem:[#allocation3 + $0x60] sm:$0xf] %v833_v52  ;;  %v1948_v55 = vor.u32 %v2163_v54, %v1947_v53  ;;  %v684_v56 = vpop.f32.mrf.mxu0  ;;  %v1419_v54 = vld [vmem:[#allocation10] sm:$0xff] }
 0x16d   : > { %1242 = vmatmul.bf16.gmra.mxu2 %v1948_v55 }
 0x16e   : > { %v773_v57 = vpop.f32.mrf.mxu1 }
 0x16f   : > { %v774_v58 = vadd.f32 %v773_v57, %v684_v56  ;;  %v2174_v57 = vld [vmem:[#allocation3 + $0xb4] sm:$0xf] }
 0x171   : > { %v834_v59 = vpack.c.bf16 %v774_v58, %v774_v58  ;;  %v2626_v53 = vpop.f32.mrf.mxu3  ;;  %v1997_v58 = vld [vmem:[#allocation3 + $0xb8] sm:$0xf0] }
 0x172   : > { %v1955_v9 = vld [vmem:[#allocation3 + $0x60] sm:$0xf]  ;;  %v2000_v60 = vor.u32 %v2174_v57, %v1997_v58  ;;  %v2013_v57 = vld [vmem:[#allocation3 + $0xd8] sm:$0xf0] }
 0x173   : > { %866 = vst [vmem:[#allocation3 + $0x68] sm:$0xf] %v834_v59  ;;  %v687_v3 = vpop.f32.mrf.mxu0 }
 0x176   : > { %v776_v6 = vpop.f32.mrf.mxu1  ;;  %726 = vmatmul.bf16.gmra.mxu0 %v1836_v0  ;;  %1361 = vmatmul.bf16.gmra.mxu3 %v2000_v60 }
 0x177   : > { %v777_v7 = vadd.f32 %v776_v6, %v687_v3 }
 0x179   : > { %v835_v8 = vpack.c.bf16 %v777_v7, %v777_v7  ;;  %815 = vmatmul.bf16.gmra.mxu1 %v1840_v4  ;;  %v2630_v7 = vpop.f32.mrf.mxu3 }
 0x17a   : > { %v2165_v10 = vld [vmem:[#allocation3 + $0x64] sm:$0xf0] }
 0x17b   : > { %867 = vst [vmem:[#allocation3 + $0x70] sm:$0xf] %v835_v8  ;;  %v1956_v12 = vor.u32 %v2165_v10, %v1955_v9  ;;  %v689_v13 = vpop.f32.mrf.mxu0  ;;  %v1420_v8 = vld [vmem:[#allocation10 + $0x8] sm:$0xff] }
 0x17d   : > { %1247 = vmatmul.bf16.gmra.mxu2 %v1956_v12 }
 0x17e   : > { %v778_v14 = vpop.f32.mrf.mxu1 }
 0x17f   : > { %v779_v15 = vadd.f32 %v778_v14, %v689_v13 }
 0x181   : > { %v836_v16 = vpack.c.bf16 %v779_v15, %v779_v15  ;;  %v2634_v19 = vpop.f32.mrf.mxu3 }
 0x182   : > { %v1963_v25 = vld [vmem:[#allocation3 + $0x70] sm:$0xf] }
 0x183   : > { %868 = vst [vmem:[#allocation3 + $0x78] sm:$0xf] %v836_v16  ;;  %v692_v18 = vpop.f32.mrf.mxu0 }
 0x186   : > { %v781_v21 = vpop.f32.mrf.mxu1 }
 0x187   : > { %v782_v23 = vadd.f32 %v781_v21, %v692_v18 }
 0x189   : > { %v837_v24 = vpack.c.bf16 %v782_v23, %v782_v23  ;;  %v2176_v23 = vld [vmem:[#allocation3 + $0xc4] sm:$0xf] }
 0x18a   : > { %v2167_v26 = vld [vmem:[#allocation3 + $0x74] sm:$0xf0] }
 0x18b   : > { %869 = vst [vmem:[#allocation3 + $0x80] sm:$0xf] %v837_v24  ;;  %v1964_v27 = vor.u32 %v2167_v26, %v1963_v25  ;;  %v694_v29 = vpop.f32.mrf.mxu0  ;;  %v2005_v24 = vld [vmem:[#allocation3 + $0xc8] sm:$0xf0] }
 0x18c   : > { %v2008_v26 = vor.u32 %v2176_v23, %v2005_v24  ;;  %v2021_v23 = vld [vmem:[#allocation3 + $0xe8] sm:$0xf0] }
 0x18d   : > { %1252 = vmatmul.bf16.gmra.mxu2 %v1964_v27 }
 0x18e   : > { %v783_v30 = vpop.f32.mrf.mxu1  ;;  %1366 = vmatmul.bf16.gmra.mxu3 %v2008_v26 }
 0x18f   : > { %v784_v31 = vadd.f32 %v783_v30, %v694_v29 }
 0x191   : > { %v838_v32 = vpack.c.bf16 %v784_v31, %v784_v31 }
 0x192   : > { %v1971_v41 = vld [vmem:[#allocation3 + $0x80] sm:$0xf] }
 0x193   : > { %870 = vst [vmem:[#allocation3 + $0x88] sm:$0xf] %v838_v32  ;;  %v697_v34 = vpop.f32.mrf.mxu0 }
 0x196   : > { %v786_v37 = vpop.f32.mrf.mxu1 }
 0x197   : > { %v787_v39 = vadd.f32 %v786_v37, %v697_v34  ;;  %v2638_v37 = vpop.f32.mrf.mxu3 }
 0x199   : > { %v839_v40 = vpack.c.bf16 %v787_v39, %v787_v39 }
 0x19a   : > { %v2169_v42 = vld [vmem:[#allocation3 + $0x84] sm:$0xf0] }
 0x19b   : > { %871 = vst [vmem:[#allocation3 + $0x90] sm:$0xf] %v839_v40  ;;  %v1972_v43 = vor.u32 %v2169_v42, %v1971_v41  ;;  %v699_v45 = vpop.f32.mrf.mxu0 }
 0x19d   : > { %1257 = vmatmul.bf16.gmra.mxu2 %v1972_v43 }
 0x19e   : > { %v788_v47 = vpop.f32.mrf.mxu1 }
 0x19f   : > { %v789_v48 = vadd.f32 %v788_v47, %v699_v45 }
 0x1a0   : > { %v1218_v49 = vpop.f32.mrf.mxu2 }
 0x1a1   : > { %v840_v50 = vpack.c.bf16 %v789_v48, %v789_v48  ;;  %v1219_v51 = vadd.f32 %v2623_v46, %v1218_v49 }
 0x1a2   : > { %v1979_v3 = vld [vmem:[#allocation3 + $0x90] sm:$0xf] }
 0x1a3   : > { %872 = vst [vmem:[#allocation3 + $0x98] sm:$0xf] %v840_v50  ;;  %v1308_v52 = vadd.f32 %v1307_v11, %v1219_v51  ;;  %v702_v56 = vpop.f32.mrf.mxu0  ;;  %v2642_v51 = vpop.f32.mrf.mxu3 }
 0x1a5   : > { %v1387_v55 = vmax.f32 %v1308_v52, 0.0  ;;  %v1423_v52 = vld [vmem:[#allocation10 + $0x20] sm:$0xff] }
 0x1a6   : > { %v791_v59 = vpop.f32.mrf.mxu1 }
 0x1a7   : > { %v1451_v61 = vadd.f32 %v1419_v54, %v1387_v55  ;;  %v792_v62 = vadd.f32 %v791_v59, %v702_v56  ;;  %v2178_v56 = vld [vmem:[#allocation3 + $0xd4] sm:$0xf] }
 0x1a8   : > { %v1220_v63 = vpop.f32.mrf.mxu2  ;;  %v2016_v59 = vor.u32 %v2178_v56, %v2013_v57 }
 0x1a9   : > { %1483 = vst [vmem:[#allocation10] sm:$0xff] %v1451_v61  ;;  %v1547_v0 = vpack.c.bf16 %v1451_v61, %v1451_v61  ;;  %v841_v1 = vpack.c.bf16 %v792_v62, %v792_v62  ;;  %v1221_v2 = vadd.f32 %v2623_v46, %v1220_v63 }
 0x1aa   : > { %v2171_v4 = vld [vmem:[#allocation3 + $0x94] sm:$0xf0]  ;;  %1371 = vmatmul.bf16.gmra.mxu3 %v2016_v59 }
 0x1ab   : > { %1579 = vst [vmem:[#allocation3 + $0x4] sm:$0xf] %v1547_v0  ;;  %v1310_v5 = vadd.f32 %v2613_v17, %v1221_v2  ;;  %v1980_v6 = vor.u32 %v2171_v4, %v1979_v3  ;;  %v704_v10 = vpop.f32.mrf.mxu0  ;;  %v2646_v4 = vpop.f32.mrf.mxu3 }
 0x1ac   : > { %873 = vst [vmem:[#allocation3 + $0xa0] sm:$0xf] %v841_v1 }
 0x1ad   : > { %v1388_v9 = vmax.f32 %v1310_v5, 0.0  ;;  %1262 = vmatmul.bf16.gmra.mxu2 %v1980_v6  ;;  %v1424_v5 = vld [vmem:[#allocation10 + $0x28] sm:$0xff] }
 0x1ae   : > { %v793_v11 = vpop.f32.mrf.mxu1 }
 0x1af   : > { %v1452_v12 = vadd.f32 %v1420_v8, %v1388_v9  ;;  %v794_v13 = vadd.f32 %v793_v11, %v704_v10 }
 0x1b0   : > { %v1223_v14 = vpop.f32.mrf.mxu2 }
 0x1b1   : > { %1484 = vst [vmem:[#allocation10 + $0x8] sm:$0xff] %v1452_v12  ;;  %v1548_v15 = vpack.c.bf16 %v1452_v12, %v1452_v12  ;;  %v842_v16 = vpack.c.bf16 %v794_v13, %v794_v13  ;;  %v1224_v18 = vadd.f32 %v2623_v46, %v1223_v14 }
 0x1b3   : > { %1580 = vst [vmem:[#allocation3 + $0xc] sm:$0xf] %v1548_v15  ;;  %v1313_v17 = vadd.f32 %v2615_v28, %v1224_v18  ;;  %v707_v22 = vpop.f32.mrf.mxu0  ;;  %v1987_v35 = vld [vmem:[#allocation3 + $0xa0] sm:$0xf]  ;;  %v2650_v18 = vpop.f32.mrf.mxu3 }
 0x1b4   : > { %874 = vst [vmem:[#allocation3 + $0xa8] sm:$0xf] %v842_v16 }
 0x1b5   : > { %v1389_v21 = vmax.f32 %v1313_v17, 0.0  ;;  %v1425_v17 = vld [vmem:[#allocation10 + $0x30] sm:$0xff] }
 0x1b6   : > { %v796_v25 = vpop.f32.mrf.mxu1 }
 0x1b7   : > { %v1453_v27 = vadd.f32 %v1421_v20, %v1389_v21  ;;  %v797_v29 = vadd.f32 %v796_v25, %v707_v22  ;;  %v2180_v22 = vld [vmem:[#allocation3 + $0xe4] sm:$0xf] }
 0x1b8   : > { %v1225_v30 = vpop.f32.mrf.mxu2  ;;  %v2024_v25 = vor.u32 %v2180_v22, %v2021_v23 }
 0x1b9   : > { %1485 = vst [vmem:[#allocation10 + $0x10] sm:$0xff] %v1453_v27  ;;  %v1549_v31 = vpack.c.bf16 %v1453_v27, %v1453_v27  ;;  %v843_v32 = vpack.c.bf16 %v797_v29, %v797_v29  ;;  %v1226_v34 = vadd.f32 %v2623_v46, %v1225_v30 }
 0x1ba   : > { %1376 = vmatmul.bf16.gmra.mxu3 %v2024_v25 }
 0x1bb   : > { %1581 = vst [vmem:[#allocation3 + $0x14] sm:$0xf] %v1549_v31  ;;  %v1315_v28 = vadd.f32 %v2617_v33, %v1226_v34  ;;  %v2173_v36 = vld [vmem:[#allocation3 + $0xa4] sm:$0xf0]  ;;  %v709_v41 = vpop.f32.mrf.mxu0 }
 0x1bc   : > { %875 = vst [vmem:[#allocation3 + $0xb0] sm:$0xf] %v843_v32  ;;  %v1988_v39 = vor.u32 %v2173_v36, %v1987_v35  ;;  %v1426_v35 = vld [vmem:[#allocation10 + $0x38] sm:$0xff] }
 0x1bd   : > { %v1390_v40 = vmax.f32 %v1315_v28, 0.0 }
 0x1be   : > { %1267 = vmatmul.bf16.gmra.mxu2 %v1988_v39  ;;  %v798_v42 = vpop.f32.mrf.mxu1 }
 0x1bf   : > { %v1454_v43 = vadd.f32 %v1422_v38, %v1390_v40  ;;  %v799_v45 = vadd.f32 %v798_v42, %v709_v41  ;;  %v2654_v40 = vpop.f32.mrf.mxu3 }
 0x1c0   : > { %v1228_v47 = vpop.f32.mrf.mxu2 }
 0x1c1   : > { %1486 = vst [vmem:[#allocation10 + $0x18] sm:$0xff] %v1454_v43  ;;  %v1550_v48 = vpack.c.bf16 %v1454_v43, %v1454_v43  ;;  %v844_v49 = vpack.c.bf16 %v799_v45, %v799_v45  ;;  %v1229_v50 = vadd.f32 %v2623_v46, %v1228_v47 }
 0x1c3   : > { %1582 = vst [vmem:[#allocation3 + $0x1c] sm:$0xf] %v1550_v48  ;;  %v1318_v33 = vadd.f32 %v2619_v44, %v1229_v50  ;;  %v712_v55 = vpop.f32.mrf.mxu0  ;;  %v1995_v2 = vld [vmem:[#allocation3 + $0xb0] sm:$0xf]  ;;  %v1427_v50 = vld [vmem:[#allocation10 + $0x40] sm:$0xff] }
 0x1c4   : > { %876 = vst [vmem:[#allocation3 + $0xb8] sm:$0xf] %v844_v49 }
 0x1c5   : > { %v1391_v54 = vmax.f32 %v1318_v33, 0.0 }
 0x1c6   : > { %v801_v58 = vpop.f32.mrf.mxu1 }
 0x1c7   : > { %v1455_v60 = vadd.f32 %v1423_v52, %v1391_v54  ;;  %v802_v61 = vadd.f32 %v801_v58, %v712_v55  ;;  %v2182_v54 = vld [vmem:[#allocation3 + $0xf4] sm:$0xf]  ;;  %v2029_v55 = vld [vmem:[#allocation3 + $0xf8] sm:$0xf0] }
 0x1c8   : > { %v1230_v62 = vpop.f32.mrf.mxu2  ;;  %v2032_v57 = vor.u32 %v2182_v54, %v2029_v55  ;;  %v1432_v55 = vld [vmem:[#allocation10 + $0x68] sm:$0xff] }
 0x1c9   : > { %1487 = vst [vmem:[#allocation10 + $0x20] sm:$0xff] %v1455_v60  ;;  %v1551_v63 = vpack.c.bf16 %v1455_v60, %v1455_v60  ;;  %v845_v0 = vpack.c.bf16 %v802_v61, %v802_v61  ;;  %v1231_v1 = vadd.f32 %v2623_v46, %v1230_v62  ;;  %v2658_v60 = vpop.f32.mrf.mxu3 }
 0x1ca   : > { %1381 = vmatmul.bf16.gmra.mxu3 %v2032_v57 }
 0x1cb   : > { %1583 = vst [vmem:[#allocation3 + $0x24] sm:$0xf] %v1551_v63  ;;  %v1320_v44 = vadd.f32 %v2626_v53, %v1231_v1  ;;  %v2175_v3 = vld [vmem:[#allocation3 + $0xb4] sm:$0xf0]  ;;  %v714_v9 = vpop.f32.mrf.mxu0 }
 0x1cc   : > { %877 = vst [vmem:[#allocation3 + $0xc0] sm:$0xf] %v845_v0  ;;  %v1996_v6 = vor.u32 %v2175_v3, %v1995_v2  ;;  %v1428_v2 = vld [vmem:[#allocation10 + $0x48] sm:$0xff] }
 0x1cd   : > { %v1392_v8 = vmax.f32 %v1320_v44, 0.0 }
 0x1ce   : > { %1272 = vmatmul.bf16.gmra.mxu2 %v1996_v6  ;;  %v803_v10 = vpop.f32.mrf.mxu1 }
 0x1cf   : > { %v1456_v11 = vadd.f32 %v1424_v5, %v1392_v8  ;;  %v804_v12 = vadd.f32 %v803_v10, %v714_v9 }
 0x1d0   : > { %v1233_v13 = vpop.f32.mrf.mxu2 }
 0x1d1   : > { %1488 = vst [vmem:[#allocation10 + $0x28] sm:$0xff] %v1456_v11  ;;  %v1552_v14 = vpack.c.bf16 %v1456_v11, %v1456_v11  ;;  %v846_v15 = vpack.c.bf16 %v804_v12, %v804_v12  ;;  %v1234_v16 = vadd.f32 %v2623_v46, %v1233_v13 }
 0x1d3   : > { %1584 = vst [vmem:[#allocation3 + $0x2c] sm:$0xf] %v1552_v14  ;;  %v1323_v53 = vadd.f32 %v2630_v7, %v1234_v16  ;;  %v717_v21 = vpop.f32.mrf.mxu0  ;;  %v2003_v34 = vld [vmem:[#allocation3 + $0xc0] sm:$0xf]  ;;  %v1429_v16 = vld [vmem:[#allocation10 + $0x50] sm:$0xff] }
 0x1d4   : > { %878 = vst [vmem:[#allocation3 + $0xc8] sm:$0xf] %v846_v15  ;;  %v1342_v15 = vpop.f32.mrf.mxu3 }
 0x1d5   : > { %v1393_v20 = vmax.f32 %v1323_v53, 0.0 }
 0x1d6   : > { %v806_v24 = vpop.f32.mrf.mxu1 }
 0x1d7   : > { %v1457_v26 = vadd.f32 %v1425_v17, %v1393_v20  ;;  %v807_v27 = vadd.f32 %v806_v24, %v717_v21 }
 0x1d8   : > { %v1235_v29 = vpop.f32.mrf.mxu2 }
 0x1d9   : > { %1489 = vst [vmem:[#allocation10 + $0x30] sm:$0xff] %v1457_v26  ;;  %v1553_v30 = vpack.c.bf16 %v1457_v26, %v1457_v26  ;;  %v847_v31 = vpack.c.bf16 %v807_v27, %v807_v27  ;;  %v1236_v32 = vadd.f32 %v2623_v46, %v1235_v29 }
 0x1db   : > { %1585 = vst [vmem:[#allocation3 + $0x34] sm:$0xf] %v1553_v30  ;;  %v1325_v7 = vadd.f32 %v2634_v19, %v1236_v32  ;;  %v2177_v28 = vld [vmem:[#allocation3 + $0xc4] sm:$0xf0]  ;;  %v719_v39 = vpop.f32.mrf.mxu0 }
 0x1dc   : > { %879 = vst [vmem:[#allocation3 + $0xd0] sm:$0xf] %v847_v31  ;;  %v2004_v36 = vor.u32 %v2177_v28, %v2003_v34  ;;  %v1344_v31 = vpop.f32.mrf.mxu3 }
 0x1dd   : > { %v1394_v38 = vmax.f32 %v1325_v7, 0.0 }
 0x1de   : > { %1277 = vmatmul.bf16.gmra.mxu2 %v2004_v36  ;;  %v808_v41 = vpop.f32.mrf.mxu1 }
 0x1df   : > { %v1458_v42 = vadd.f32 %v1426_v35, %v1394_v38  ;;  %v809_v43 = vadd.f32 %v808_v41, %v719_v39 }
 0x1e0   : > { %v1238_v45 = vpop.f32.mrf.mxu2 }
 0x1e1   : > { %1490 = vst [vmem:[#allocation10 + $0x38] sm:$0xff] %v1458_v42  ;;  %v1554_v47 = vpack.c.bf16 %v1458_v42, %v1458_v42  ;;  %v848_v48 = vpack.c.bf16 %v809_v43, %v809_v43  ;;  %v1239_v49 = vadd.f32 %v2623_v46, %v1238_v45  ;;  %v1431_v43 = vld [vmem:[#allocation10 + $0x60] sm:$0xff] }
 0x1e3   : > { %1586 = vst [vmem:[#allocation3 + $0x3c] sm:$0xf] %v1554_v47  ;;  %v1328_v19 = vadd.f32 %v2638_v37, %v1239_v49  ;;  %v722_v52 = vpop.f32.mrf.mxu0  ;;  %v2011_v1 = vld [vmem:[#allocation3 + $0xd0] sm:$0xf] }
 0x1e4   : > { %880 = vst [vmem:[#allocation3 + $0xd8] sm:$0xf] %v848_v48  ;;  %v1347_v47 = vpop.f32.mrf.mxu3 }
 0x1e5   : > { %v1395_v33 = vmax.f32 %v1328_v19, 0.0 }
 0x1e6   : > { %v811_v56 = vpop.f32.mrf.mxu1 }
 0x1e7   : > { %v1459_v58 = vadd.f32 %v1427_v50, %v1395_v33  ;;  %v812_v59 = vadd.f32 %v811_v56, %v722_v52 }
 0x1e8   : > { %v1240_v61 = vpop.f32.mrf.mxu2 }
 0x1e9   : > { %1491 = vst [vmem:[#allocation10 + $0x40] sm:$0xff] %v1459_v58  ;;  %v1555_v62 = vpack.c.bf16 %v1459_v58, %v1459_v58  ;;  %v849_v63 = vpack.c.bf16 %v812_v59, %v812_v59  ;;  %v1241_v0 = vadd.f32 %v2623_v46, %v1240_v61 }
 0x1eb   : > { %1587 = vst [vmem:[#allocation3 + $0x44] sm:$0xf] %v1555_v62  ;;  %v1330_v37 = vadd.f32 %v2642_v51, %v1241_v0  ;;  %v2179_v44 = vld [vmem:[#allocation3 + $0xd4] sm:$0xf0]  ;;  %v724_v6 = vpop.f32.mrf.mxu0 }
 0x1ec   : > { %881 = vst [vmem:[#allocation3 + $0xe0] sm:$0xf] %v849_v63  ;;  %v2012_v3 = vor.u32 %v2179_v44, %v2011_v1  ;;  %v1349_v58 = vpop.f32.mrf.mxu3  ;;  %v1433_v0 = vld [vmem:[#allocation10 + $0x70] sm:$0xff] }
 0x1ed   : > { %v1396_v5 = vmax.f32 %v1330_v37, 0.0 }
 0x1ee   : > { %1282 = vmatmul.bf16.gmra.mxu2 %v2012_v3  ;;  %v813_v8 = vpop.f32.mrf.mxu1 }
 0x1ef   : > { %v1460_v9 = vadd.f32 %v1428_v2, %v1396_v5  ;;  %v814_v10 = vadd.f32 %v813_v8, %v724_v6  ;;  %v1434_v6 = vld [vmem:[#allocation10 + $0x78] sm:$0xff] }
 0x1f0   : > { %v1243_v11 = vpop.f32.mrf.mxu2 }
 0x1f1   : > { %1492 = vst [vmem:[#allocation10 + $0x48] sm:$0xff] %v1460_v9  ;;  %v1556_v12 = vpack.c.bf16 %v1460_v9, %v1460_v9  ;;  %v850_v13 = vpack.c.bf16 %v814_v10, %v814_v10  ;;  %v1244_v14 = vadd.f32 %v2623_v46, %v1243_v11 }
 0x1f3   : > { %1588 = vst [vmem:[#allocation3 + $0x4c] sm:$0xf] %v1556_v12  ;;  %v1333_v51 = vadd.f32 %v2646_v4, %v1244_v14  ;;  %v727_v17 = vpop.f32.mrf.mxu0  ;;  %v2019_v29 = vld [vmem:[#allocation3 + $0xe0] sm:$0xf] }
 0x1f4   : > { %882 = vst [vmem:[#allocation3 + $0xe8] sm:$0xf] %v850_v13  ;;  %v1430_v4 = vld [vmem:[#allocation10 + $0x58] sm:$0xff]  ;;  %v1352_v3 = vpop.f32.mrf.mxu3 }
 0x1f5   : > { %v1397_v53 = vmax.f32 %v1333_v51, 0.0 }
 0x1f6   : > { %v816_v20 = vpop.f32.mrf.mxu1 }
 0x1f7   : > { %v1461_v21 = vadd.f32 %v1429_v16, %v1397_v53  ;;  %v817_v22 = vadd.f32 %v816_v20, %v727_v17 }
 0x1f8   : > { %v1245_v23 = vpop.f32.mrf.mxu2 }
 0x1f9   : > { %1493 = vst [vmem:[#allocation10 + $0x50] sm:$0xff] %v1461_v21  ;;  %v1557_v24 = vpack.c.bf16 %v1461_v21, %v1461_v21  ;;  %v851_v25 = vpack.c.bf16 %v817_v22, %v817_v22  ;;  %v1246_v26 = vadd.f32 %v2623_v46, %v1245_v23  ;;  %v1436_v22 = vld [vmem:[#allocation10 + $0x88] sm:$0xff] }
 0x1fb   : > { %1589 = vst [vmem:[#allocation3 + $0x54] sm:$0xf] %v1557_v24  ;;  %v1335_v27 = vadd.f32 %v2650_v18, %v1246_v26  ;;  %v2181_v30 = vld [vmem:[#allocation3 + $0xe4] sm:$0xf0]  ;;  %v729_v34 = vpop.f32.mrf.mxu0 }
 0x1fc   : > { %883 = vst [vmem:[#allocation3 + $0xf0] sm:$0xf] %v851_v25  ;;  %v2020_v32 = vor.u32 %v2181_v30, %v2019_v29  ;;  %v1354_v14 = vpop.f32.mrf.mxu3 }
 0x1fd   : > { %v1398_v7 = vmax.f32 %v1335_v27, 0.0 }
 0x1fe   : > { %1287 = vmatmul.bf16.gmra.mxu2 %v2020_v32  ;;  %v818_v28 = vpop.f32.mrf.mxu1 }
 0x1ff   : > { %v1462_v35 = vadd.f32 %v1430_v4, %v1398_v7  ;;  %v819_v36 = vadd.f32 %v818_v28, %v729_v34 }
 0x200   : > { %v1248_v38 = vpop.f32.mrf.mxu2 }
 0x201   : > { %1494 = vst [vmem:[#allocation10 + $0x58] sm:$0xff] %v1462_v35  ;;  %v1558_v39 = vpack.c.bf16 %v1462_v35, %v1462_v35  ;;  %v852_v41 = vpack.c.bf16 %v819_v36, %v819_v36  ;;  %v1249_v42 = vadd.f32 %v2623_v46, %v1248_v38  ;;  %v1438_v38 = vld [vmem:[#allocation10 + $0x98] sm:$0xff] }
 0x203   : > { %1590 = vst [vmem:[#allocation3 + $0x5c] sm:$0xf] %v1558_v39  ;;  %v1338_v18 = vadd.f32 %v2654_v40, %v1249_v42  ;;  %v2027_v52 = vld [vmem:[#allocation3 + $0xf0] sm:$0xf] }
 0x204   : > { %884 = vst [vmem:[#allocation3 + $0xf8] sm:$0xf] %v852_v41  ;;  %v1357_v24 = vpop.f32.mrf.mxu3 }
 0x205   : > { %v1399_v45 = vmax.f32 %v1338_v18, 0.0 }
 0x207   : > { %v1463_v48 = vadd.f32 %v1431_v43, %v1399_v45 }
 0x208   : > { %v1250_v49 = vpop.f32.mrf.mxu2 }
 0x209   : > { %1495 = vst [vmem:[#allocation10 + $0x60] sm:$0xff] %v1463_v48  ;;  %v1559_v19 = vpack.c.bf16 %v1463_v48, %v1463_v48  ;;  %v1251_v50 = vadd.f32 %v2623_v46, %v1250_v49  ;;  %v1439_v48 = vld [vmem:[#allocation10 + $0xa0] sm:$0xff] }
 0x20b   : > { %1591 = vst [vmem:[#allocation3 + $0x64] sm:$0xf] %v1559_v19  ;;  %v1340_v33 = vadd.f32 %v2658_v60, %v1251_v50  ;;  %v2183_v54 = vld [vmem:[#allocation3 + $0xf4] sm:$0xf0] }
 0x20c   : > { %v2028_v56 = vor.u32 %v2183_v54, %v2027_v52  ;;  %v1359_v7 = vpop.f32.mrf.mxu3 }
 0x20d   : > { %v1400_v57 = vmax.f32 %v1340_v33, 0.0 }
 0x20e   : > { %1292 = vmatmul.bf16.gmra.mxu2 %v2028_v56  ;;  %v1440_v56 = vld [vmem:[#allocation10 + $0xa8] sm:$0xff] }
 0x20f   : > { %v1464_v40 = vadd.f32 %v1432_v55, %v1400_v57 }
 0x210   : > { %v1253_v59 = vpop.f32.mrf.mxu2 }
 0x211   : > { %1496 = vst [vmem:[#allocation10 + $0x68] sm:$0xff] %v1464_v40  ;;  %v1560_v61 = vpack.c.bf16 %v1464_v40, %v1464_v40  ;;  %v1254_v62 = vadd.f32 %v2623_v46, %v1253_v59 }
 0x213   : > { %1592 = vst [vmem:[#allocation3 + $0x6c] sm:$0xf] %v1560_v61  ;;  %v1343_v63 = vadd.f32 %v1342_v15, %v1254_v62  ;;  %v1435_v15 = vld [vmem:[#allocation10 + $0x80] sm:$0xff] }
 0x214   : > { %v1362_v43 = vpop.f32.mrf.mxu3 }
 0x215   : > { %v1401_v37 = vmax.f32 %v1343_v63, 0.0  ;;  %v1441_v63 = vld [vmem:[#allocation10 + $0xb0] sm:$0xff] }
 0x217   : > { %v1465_v1 = vadd.f32 %v1433_v0, %v1401_v37 }
 0x218   : > { %v1255_v44 = vpop.f32.mrf.mxu2 }
 0x219   : > { %1497 = vst [vmem:[#allocation10 + $0x70] sm:$0xff] %v1465_v1  ;;  %v1561_v60 = vpack.c.bf16 %v1465_v1, %v1465_v1  ;;  %v1256_v2 = vadd.f32 %v2623_v46, %v1255_v44 }
 0x21b   : > { %1593 = vst [vmem:[#allocation3 + $0x74] sm:$0xf] %v1561_v60  ;;  %v1345_v5 = vadd.f32 %v1344_v31, %v1256_v2  ;;  %v1437_v31 = vld [vmem:[#allocation10 + $0x90] sm:$0xff] }
 0x21c   : > { %v1364_v54 = vpop.f32.mrf.mxu3 }
 0x21d   : > { %v1402_v8 = vmax.f32 %v1345_v5, 0.0  ;;  %v1442_v5 = vld [vmem:[#allocation10 + $0xb8] sm:$0xff] }
 0x21f   : > { %v1466_v9 = vadd.f32 %v1434_v6, %v1402_v8 }
 0x220   : > { %v1258_v10 = vpop.f32.mrf.mxu2 }
 0x221   : > { %1498 = vst [vmem:[#allocation10 + $0x78] sm:$0xff] %v1466_v9  ;;  %v1562_v11 = vpack.c.bf16 %v1466_v9, %v1466_v9  ;;  %v1259_v12 = vadd.f32 %v2623_v46, %v1258_v10 }
 0x223   : > { %1594 = vst [vmem:[#allocation3 + $0x7c] sm:$0xf] %v1562_v11  ;;  %v1348_v13 = vadd.f32 %v1347_v47, %v1259_v12 }
 0x224   : > { %v1367_v0 = vpop.f32.mrf.mxu3 }
 0x225   : > { %v1403_v51 = vmax.f32 %v1348_v13, 0.0 }
 0x227   : > { %v1467_v16 = vadd.f32 %v1435_v15, %v1403_v51 }
 0x228   : > { %v1260_v53 = vpop.f32.mrf.mxu2 }
 0x229   : > { %1499 = vst [vmem:[#allocation10 + $0x80] sm:$0xff] %v1467_v16  ;;  %v1563_v17 = vpack.c.bf16 %v1467_v16, %v1467_v16  ;;  %v1261_v20 = vadd.f32 %v2623_v46, %v1260_v53 }
 0x22b   : > { %1595 = vst [vmem:[#allocation3 + $0x84] sm:$0xf] %v1563_v17  ;;  %v1350_v21 = vadd.f32 %v1349_v58, %v1261_v20 }
 0x22c   : > { %v1369_v8 = vpop.f32.mrf.mxu3 }
 0x22d   : > { %v1404_v23 = vmax.f32 %v1350_v21, 0.0 }
 0x22f   : > { %v1468_v25 = vadd.f32 %v1436_v22, %v1404_v23  ;;  %v1444_v22 = vld [vmem:[#allocation10 + $0xc8] sm:$0xff] }
 0x230   : > { %v1263_v26 = vpop.f32.mrf.mxu2 }
 0x231   : > { %1500 = vst [vmem:[#allocation10 + $0x88] sm:$0xff] %v1468_v25  ;;  %v1564_v27 = vpack.c.bf16 %v1468_v25, %v1468_v25  ;;  %v1264_v29 = vadd.f32 %v2623_v46, %v1263_v26 }
 0x233   : > { %1596 = vst [vmem:[#allocation3 + $0x8c] sm:$0xf] %v1564_v27  ;;  %v1353_v30 = vadd.f32 %v1352_v3, %v1264_v29 }
 0x234   : > { %v1372_v53 = vpop.f32.mrf.mxu3 }
 0x235   : > { %v1405_v4 = vmax.f32 %v1353_v30, 0.0 }
 0x237   : > { %v1469_v32 = vadd.f32 %v1437_v31, %v1405_v4  ;;  %v1445_v31 = vld [vmem:[#allocation10 + $0xd0] sm:$0xff] }
 0x238   : > { %v1265_v34 = vpop.f32.mrf.mxu2 }
 0x239   : > { %1501 = vst [vmem:[#allocation10 + $0x90] sm:$0xff] %v1469_v32  ;;  %v1565_v28 = vpack.c.bf16 %v1469_v32, %v1469_v32  ;;  %v1266_v35 = vadd.f32 %v2623_v46, %v1265_v34 }
 0x23b   : > { %1597 = vst [vmem:[#allocation3 + $0x94] sm:$0xf] %v1565_v28  ;;  %v1355_v36 = vadd.f32 %v1354_v14, %v1266_v35  ;;  %v1443_v14 = vld [vmem:[#allocation10 + $0xc0] sm:$0xff] }
 0x23c   : > { %v1374_v29 = vpop.f32.mrf.mxu3 }
 0x23d   : > { %v1406_v39 = vmax.f32 %v1355_v36, 0.0  ;;  %v1446_v36 = vld [vmem:[#allocation10 + $0xd8] sm:$0xff] }
 0x23f   : > { %v1470_v41 = vadd.f32 %v1438_v38, %v1406_v39 }
 0x241   : > { %1502 = vst [vmem:[#allocation10 + $0x98] sm:$0xff] %v1470_v41  ;;  %v1566_v42 = vpack.c.bf16 %v1470_v41, %v1470_v41  ;;  %v1268_v18 = vpop.f32.mrf.mxu2 }
 0x242   : > { %v1269_v45 = vadd.f32 %v2623_v46, %v1268_v18 }
 0x243   : > { %1598 = vst [vmem:[#allocation3 + $0x9c] sm:$0xf] %v1566_v42 }
 0x244   : > { %v1358_v47 = vadd.f32 %v1357_v24, %v1269_v45  ;;  %v1377_v38 = vpop.f32.mrf.mxu3 }
 0x246   : > { %v1407_v49 = vmax.f32 %v1358_v47, 0.0  ;;  %v1447_v47 = vld [vmem:[#allocation10 + $0xe0] sm:$0xff] }
 0x248   : > { %v1471_v19 = vadd.f32 %v1439_v48, %v1407_v49 }
 0x249   : > { %v1270_v50 = vpop.f32.mrf.mxu2 }
 0x24a   : > { %1503 = vst [vmem:[#allocation10 + $0xa0] sm:$0xff] %v1471_v19  ;;  %v1567_v33 = vpack.c.bf16 %v1471_v19, %v1471_v19  ;;  %v1271_v52 = vadd.f32 %v2623_v46, %v1270_v50 }
 0x24c   : > { %1599 = vst [vmem:[#allocation3 + $0xa4] sm:$0xf] %v1567_v33  ;;  %v1360_v55 = vadd.f32 %v1359_v7, %v1271_v52  ;;  %v1379_v49 = vpop.f32.mrf.mxu3 }
 0x24e   : > { %v1408_v57 = vmax.f32 %v1360_v55, 0.0  ;;  %v1448_v55 = vld [vmem:[#allocation10 + $0xe8] sm:$0xff] }
 0x250   : > { %v1472_v40 = vadd.f32 %v1440_v56, %v1408_v57 }
 0x251   : > { %v1273_v58 = vpop.f32.mrf.mxu2 }
 0x252   : > { %1504 = vst [vmem:[#allocation10 + $0xa8] sm:$0xff] %v1472_v40  ;;  %v1568_v59 = vpack.c.bf16 %v1472_v40, %v1472_v40  ;;  %v1274_v61 = vadd.f32 %v2623_v46, %v1273_v58 }
 0x254   : > { %1600 = vst [vmem:[#allocation3 + $0xac] sm:$0xf] %v1568_v59  ;;  %v1363_v62 = vadd.f32 %v1362_v43, %v1274_v61  ;;  %v1382_v40 = vpop.f32.mrf.mxu3 }
 0x256   : > { %v1409_v37 = vmax.f32 %v1363_v62, 0.0 }
 0x258   : > { %v1473_v1 = vadd.f32 %v1441_v63, %v1409_v37  ;;  %v1449_v63 = vld [vmem:[#allocation10 + $0xf0] sm:$0xff] }
 0x259   : > { %v1275_v44 = vpop.f32.mrf.mxu2 }
 0x25a   : > { %1505 = vst [vmem:[#allocation10 + $0xb0] sm:$0xff] %v1473_v1  ;;  %v1569_v60 = vpack.c.bf16 %v1473_v1, %v1473_v1  ;;  %v1276_v2 = vadd.f32 %v2623_v46, %v1275_v44 }
 0x25c   : > { %1601 = vst [vmem:[#allocation3 + $0xb4] sm:$0xf] %v1569_v60  ;;  %v1365_v3 = vadd.f32 %v1364_v54, %v1276_v2  ;;  %v1384_v2 = vpop.f32.mrf.mxu3 }
 0x25e   : > { %v1410_v6 = vmax.f32 %v1365_v3, 0.0 }
 0x260   : > { %v1474_v9 = vadd.f32 %v1442_v5, %v1410_v6  ;;  %v1450_v5 = vld [vmem:[#allocation10 + $0xf8] sm:$0xff] }
 0x261   : > { %v1278_v10 = vpop.f32.mrf.mxu2 }
 0x262   : > { %1506 = vst [vmem:[#allocation10 + $0xb8] sm:$0xff] %v1474_v9  ;;  %v1570_v11 = vpack.c.bf16 %v1474_v9, %v1474_v9  ;;  %v1279_v12 = vadd.f32 %v2623_v46, %v1278_v10 }
 0x264   : > { %1602 = vst [vmem:[#allocation3 + $0xbc] sm:$0xf] %v1570_v11  ;;  %v1368_v13 = vadd.f32 %v1367_v0, %v1279_v12 }
 0x266   : > { %v1411_v15 = vmax.f32 %v1368_v13, 0.0 }
 0x268   : > { %v1475_v51 = vadd.f32 %v1443_v14, %v1411_v15 }
 0x269   : > { %v1280_v16 = vpop.f32.mrf.mxu2 }
 0x26a   : > { %1507 = vst [vmem:[#allocation10 + $0xc0] sm:$0xff] %v1475_v51  ;;  %v1571_v17 = vpack.c.bf16 %v1475_v51, %v1475_v51  ;;  %v1281_v20 = vadd.f32 %v2623_v46, %v1280_v16 }
 0x26c   : > { %1603 = vst [vmem:[#allocation3 + $0xc4] sm:$0xf] %v1571_v17  ;;  %v1370_v21 = vadd.f32 %v1369_v8, %v1281_v20 }
 0x26e   : > { %v1412_v23 = vmax.f32 %v1370_v21, 0.0 }
 0x270   : > { %v1476_v24 = vadd.f32 %v1444_v22, %v1412_v23 }
 0x271   : > { %v1283_v25 = vpop.f32.mrf.mxu2 }
 0x272   : > { %1508 = vst [vmem:[#allocation10 + $0xc8] sm:$0xff] %v1476_v24  ;;  %v1572_v26 = vpack.c.bf16 %v1476_v24, %v1476_v24  ;;  %v1284_v27 = vadd.f32 %v2623_v46, %v1283_v25 }
 0x274   : > { %1604 = vst [vmem:[#allocation3 + $0xcc] sm:$0xf] %v1572_v26  ;;  %v1373_v30 = vadd.f32 %v1372_v53, %v1284_v27 }
 0x276   : > { %v1413_v4 = vmax.f32 %v1373_v30, 0.0 }
 0x278   : > { %v1477_v32 = vadd.f32 %v1445_v31, %v1413_v4 }
 0x279   : > { %v1285_v7 = vpop.f32.mrf.mxu2 }
 0x27a   : > { %1509 = vst [vmem:[#allocation10 + $0xd0] sm:$0xff] %v1477_v32  ;;  %v1573_v34 = vpack.c.bf16 %v1477_v32, %v1477_v32  ;;  %v1286_v28 = vadd.f32 %v2623_v46, %v1285_v7 }
 0x27c   : > { %1605 = vst [vmem:[#allocation3 + $0xd4] sm:$0xf] %v1573_v34  ;;  %v1375_v35 = vadd.f32 %v1374_v29, %v1286_v28 }
 0x27e   : > { %v1414_v39 = vmax.f32 %v1375_v35, 0.0 }
 0x280   : > { %v1478_v41 = vadd.f32 %v1446_v36, %v1414_v39 }
 0x281   : > { %v1288_v42 = vpop.f32.mrf.mxu2 }
 0x282   : > { %1510 = vst [vmem:[#allocation10 + $0xd8] sm:$0xff] %v1478_v41  ;;  %v1574_v18 = vpack.c.bf16 %v1478_v41, %v1478_v41  ;;  %v1289_v43 = vadd.f32 %v2623_v46, %v1288_v42 }
 0x284   : > { %1606 = vst [vmem:[#allocation3 + $0xdc] sm:$0xf] %v1574_v18  ;;  %v1378_v45 = vadd.f32 %v1377_v38, %v1289_v43 }
 0x286   : > { %v1415_v48 = vmax.f32 %v1378_v45, 0.0 }
 0x288   : > { %v1479_v19 = vadd.f32 %v1447_v47, %v1415_v48 }
 0x289   : > { %v1290_v50 = vpop.f32.mrf.mxu2 }
 0x28a   : > { %1511 = vst [vmem:[#allocation10 + $0xe0] sm:$0xff] %v1479_v19  ;;  %v1575_v33 = vpack.c.bf16 %v1479_v19, %v1479_v19  ;;  %v1291_v52 = vadd.f32 %v2623_v46, %v1290_v50 }
 0x28c   : > { %1607 = vst [vmem:[#allocation3 + $0xe4] sm:$0xf] %v1575_v33  ;;  %v1380_v54 = vadd.f32 %v1379_v49, %v1291_v52 }
 0x28e   : > { %v1416_v56 = vmax.f32 %v1380_v54, 0.0 }
 0x290   : > { %v1480_v57 = vadd.f32 %v1448_v55, %v1416_v56 }
 0x291   : > { %v1293_v58 = vpop.f32.mrf.mxu2 }
 0x292   : > { %1512 = vst [vmem:[#allocation10 + $0xe8] sm:$0xff] %v1480_v57  ;;  %v1576_v59 = vpack.c.bf16 %v1480_v57, %v1480_v57  ;;  %v1294_v61 = vadd.f32 %v2623_v46, %v1293_v58 }
 0x294   : > { %1608 = vst [vmem:[#allocation3 + $0xec] sm:$0xf] %v1576_v59  ;;  %v1383_v62 = vadd.f32 %v1382_v40, %v1294_v61 }
 0x296   : > { %v1417_v0 = vmax.f32 %v1383_v62, 0.0 }
 0x298   : > { %v1481_v37 = vadd.f32 %v1449_v63, %v1417_v0 }
 0x299   : > { %v1295_v1 = vpop.f32.mrf.mxu2 }
 0x29a   : > { %1513 = vst [vmem:[#allocation10 + $0xf0] sm:$0xff] %v1481_v37  ;;  %v1577_v44 = vpack.c.bf16 %v1481_v37, %v1481_v37  ;;  %v1296_v60 = vadd.f32 %v2623_v46, %v1295_v1 }
 0x29c   : > { %1609 = vst [vmem:[#allocation3 + $0xf4] sm:$0xf] %v1577_v44  ;;  %v1385_v3 = vadd.f32 %v1384_v2, %v1296_v60 }
 0x29e   : > { %v1418_v6 = vmax.f32 %v1385_v3, 0.0 }
 0x2a0   : > { %v1482_v8 = vadd.f32 %v1450_v5, %v1418_v6 }
 0x2a2   : > { %1514 = vst [vmem:[#allocation10 + $0xf8] sm:$0xff] %v1482_v8  ;;  %v1578_v9 = vpack.c.bf16 %v1482_v8, %v1482_v8 }
 0x2a3   : > { %2205 = dma.vmem_to_hbm [thread:$0]  (%p2216_p7), %s1617_s18, 4096, %s1619_s21, [#allocation7], %s2447_s26, %s2447_s26, %s2448_s22  }
 0x2a4   : > { %1610 = vst [vmem:[#allocation3 + $0xfc] sm:$0xf] %v1578_v9 }
 0x2a5   : > { %2423 = dma.done.wait (%p2216_p7), [#allocation7], 4096  }
 0x2a6   : > { %2425 = vsyncadd (%p2216_p7), [#allocation7], 4294963200 }
 0x2a7 PF: > { %p18_p11 = scmp.ge.s32.totalorder %s2496_s20, 5   ;;  %s2714_s15 = smov %s2432_s16 }
 0x2a8   : > { %s2715_s16 = smov %s2436_s17  ;;  %s2716_s17 = smov %s2506_s23 }
 0x2a9   : > { %s2717_s18 = smov %s2496_s20  ;;  %20 = sbr.rel (!%p18_p11) target bundleno = 6 (0x6), region = 92 }
 0x2ae   :  { %1635 = vsyncpa [#allocation6], 1 }
 0x2af   :  { %1637 = vsyncpa [#allocation6 + $0x1], 1 }
 0x2b0   :  { %1638 = vsyncpa [#allocation9], 1 }
 0x2b1   :  { %1640 = vsyncpa [#allocation9 + $0x1], 1 }
 0x2b2   :  { %1641 = vsyncpa [#allocation7], 1 }
 0x2b3   :  { %1643 = vsyncpa [#allocation7 + $0x1], 1 }
 0x2b4   :  { %1644 = vsyncmov [#allocation4] }
 0x2b7   :  { %s1645_s19 = vpop.sfrf %1644 }
 0x2b8   :  { %p2101_p2 = scmp.ne.s32.totalorder %s1645_s19, 0 }
 0x2ba   :  { %1649 = shalt.err (%p2101_p2)  }
 0x2bb   :  { %1651 = vsyncmov [#allocation4 + $0x1] }
 0x2be   :  { %s1652_s24 = vpop.sfrf %1651 }
 0x2bf   :  { %p2102_p3 = scmp.ne.s32.totalorder %s1652_s24, 0 }
 0x2c1   :  { %1656 = shalt.err (%p2102_p3)  }

</bundles_post_ra>
